<compile_context>
chip_gen: v7x
topology: tpu7x:2x2x1
jax: 0.10.0
libtpu: 0.0.40
codegen_flags: <defaults>
</compile_context>

<pallas_src>
import functools

import jax
import jax.numpy as jnp
from jax import lax
from jax.experimental import pallas as pl
from jax.experimental.pallas import tpu as pltpu


def _round_up(x: int, m: int) -> int:
    return ((x + m - 1) // m) * m


def _token_per_axis_embed_kernel(
    idx_ref, table_ref, out_ref, *, num_axes, num_bins, embed_dim
):
    """One row-tile of the per-axis embedding gather.

    idx_ref:   (tile_bt, A) int32       discrete bin index per (b,t) row and axis
    table_ref: (A, num_bins, D) f32     per-axis embedding tables (VMEM-resident,
                                        same block every grid step)
    out_ref:   (tile_bt, A*D) f32       row r = [emb(axis 0) | emb(axis 1) | ...],
                                        byte-identical to (B,T,A,D) row-major
    """
    tile_bt = idx_ref.shape[0]

    # PyTorch advanced indexing would raise on out-of-range bins; clamp instead
    # of silently producing a zero row or gathering a neighbouring axis's table.
    idx = jnp.clip(idx_ref[...], 0, num_bins - 1)  # (tile_bt, A) int32

    # Shared bin iota, one (tile_bt, nbins) compare per axis -> B*T*A*nbins
    # total one-hot compares (8x fewer than a flat (BTA, A*nbins) one-hot).
    bins = lax.broadcasted_iota(jnp.int32, (tile_bt, num_bins), 1)

    for a in range(num_axes):  # static unroll, A is small (8)
        onehot = (idx[:, a : a + 1] == bins).astype(table_ref.dtype)  # (tile_bt, nbins)
        # Exact gather via MXU: exactly one 1.0 per row; HIGHEST precision keeps
        # the full f32 mantissa so the result is bit-exact vs. the gather.
        emb = jnp.dot(
            onehot,
            table_ref[a],  # (nbins, D) tile-aligned slice of the 3-D table
            preferred_element_type=jnp.float32,
            precision=lax.Precision.HIGHEST,
        )
        out_ref[:, a * embed_dim : (a + 1) * embed_dim] = emb.astype(out_ref.dtype)


def embed_discrete_actions(discrete_actions, table, *, max_tile_rows=512):
    """Pallas equivalent of TokenPerAxisActionEmbedder.embed_discrete_actions.

    discrete_actions: (B, T, A) integer tensor of bin indices per axis.
    table:            (A, max_num_action_bins, D) float32 embedding parameter.
    returns:          (B, T, A, D) float32 embeddings.
    """
    B, T, A = discrete_actions.shape
    A_t, nbins, D = table.shape
    assert A == A_t
    BT = B * T

    # Lane-dense indices: (B*T, A). Free reshape (row-major), no transpose.
    idx = discrete_actions.astype(jnp.int32).reshape(BT, A)

    # Row tile: multiple of 8 sublanes, capped at max_tile_rows. For the toy
    # shape this is a single grid step; for production B*T the "parallel" row
    # axis shards across TensorCores and pipelines DMAs.
    tile = min(_round_up(max(BT, 1), 8), _round_up(max_tile_rows, 8))
    BT_pad = _round_up(BT, tile)
    if BT_pad != BT:
        idx = jnp.pad(idx, ((0, BT_pad - BT), (0, 0)))  # padded rows gather bin 0

    kernel = functools.partial(
        _token_per_axis_embed_kernel, num_axes=A, num_bins=nbins, embed_dim=D
    )

    out_flat = pl.pallas_call(
        kernel,
        out_shape=jax.ShapeDtypeStruct((BT_pad, A * D), table.dtype),
        grid_spec=pltpu.PrefetchScalarGridSpec(
            num_scalar_prefetch=0,
            grid=(BT_pad // tile,),
            in_specs=[
                pl.BlockSpec((tile, A), lambda i: (i, 0)),
                # Constant block index -> table stays resident across steps.
                pl.BlockSpec((A, nbins, D), lambda i: (0, 0, 0)),
            ],
            out_specs=pl.BlockSpec((tile, A * D), lambda i: (i, 0)),
        ),
        compiler_params=pltpu.CompilerParams(
            dimension_semantics=("parallel",),
            vmem_limit_bytes=32 * 1024 * 1024,
        ),
    )(idx, table)

    if BT_pad != BT:
        out_flat = out_flat[:BT]

    # (B*T, A*D) -> (B, T, A, D): a free row-major reshape, as in the module.
    return out_flat.reshape(B, T, A, D)


def surrogate_discretize(continuous_actions, num_bins):
    """Deterministic stand-in for PoseActionTokenizer.convert_continuous_to_discrete.

    Maps values in [-1, 1] to integer bins in [0, num_bins - 1].
    """
    scaled = (continuous_actions + 1.0) * 0.5 * (num_bins - 1)
    return jnp.clip(jnp.round(scaled), 0, num_bins - 1).astype(jnp.int32)


if __name__ == "__main__":
    # Small shapes consistent with the module's forward.
    B, T = 2, 8                # batch, timesteps
    num_axes = 8               # A: one token per action axis
    max_num_action_bins = 50   # bins per axis
    embed_dim = 32             # D

    key = jax.random.PRNGKey(0)
    k_param, k_act = jax.random.split(key)

    # Deterministic parameter init (orthogonal, matching nn.init.orthogonal_ intent).
    table = jax.nn.initializers.orthogonal()(
        k_param, (num_axes, max_num_action_bins, embed_dim), jnp.float32
    )

    # Deterministic "continuous actions" in [-1, 1], concatenated over pose
    # action types into a single (B, T, A) axis dimension (as forward() does).
    continuous = jax.random.uniform(
        k_act, (B, T, num_axes), minval=-1.0, maxval=1.0, dtype=jnp.float32
    )
    discrete = surrogate_discretize(continuous, max_num_action_bins)  # (B, T, A)

    out = embed_discrete_actions(discrete, table)
    out = jax.block_until_ready(out)
    assert out.shape == (B, T, num_axes, embed_dim)

    # Pure-JAX reference: out[b,t,a,:] = table[a, discrete[b,t,a], :]
    axis_ids = jnp.broadcast_to(jnp.arange(num_axes), (B, T, num_axes))
    ref = table[axis_ids, discrete]  # (B, T, A, D)
    assert jnp.array_equal(out, ref), "Pallas output mismatch vs reference gather"

    print("KERNEL_OK")
</pallas_src>

<mosaic_0001>
module attributes {stable_mosaic.version = 11 : i64} {
  func.func @_token_per_axis_embed_kernel(%arg0: i32, %arg1: memref<16x8xi32, #tpu.memory_space<vmem>>, %arg2: memref<8x50x32xf32, #tpu.memory_space<vmem>>, %arg3: memref<16x256xf32, #tpu.memory_space<vmem>>) attributes {dimension_semantics = [#tpu.dimension_semantics<parallel>], iteration_bounds = array<i64: 1>, scalar_prefetch = 0 : i64, scratch_operands = 0 : i64, tpu.core_type = #tpu.core_type<tc>, window_params = [{transform_indices = @transform_0, window_bounds = array<i64: 16, 8>}, {pipeline_mode = #tpu.pipeline_mode<synchronous>, transform_indices = @transform_1, window_bounds = array<i64: 8, 50, 32>}, {transform_indices = @transform_2, window_bounds = array<i64: 16, 256>}]} {
    %c0 = arith.constant 0 : index
    %c0_0 = arith.constant 0 : index
    %0 = vector.load %arg1[%c0, %c0_0] : memref<16x8xi32, #tpu.memory_space<vmem>>, vector<16x8xi32>
    %c0_i32 = arith.constant 0 : i32
    %c49_i32 = arith.constant 49 : i32
    %1 = vector.broadcast %c0_i32 : i32 to vector<16x8xi32>
    %2 = arith.maxsi %1, %0 : vector<16x8xi32>
    %3 = vector.broadcast %c49_i32 : i32 to vector<16x8xi32>
    %4 = arith.minsi %3, %2 : vector<16x8xi32>
    %5 = tpu.iota {dimensions = array<i32: 1>} : vector<16x50xi32>
    %6 = vector.extract_strided_slice %4 {offsets = [0, 0], sizes = [16, 1], strides = [1, 1]} : vector<16x8xi32> to vector<16x1xi32>
    %7 = vector.broadcast %6 : vector<16x1xi32> to vector<16x50xi32>
    %8 = arith.cmpi eq, %7, %5 : vector<16x50xi32>
    %9 = arith.extui %8 : vector<16x50xi1> to vector<16x50xi32>
    %10 = arith.sitofp %9 : vector<16x50xi32> to vector<16x50xf32>
    %c0_1 = arith.constant 0 : index
    %c0_2 = arith.constant 0 : index
    %c0_3 = arith.constant 0 : index
    %11 = vector.load %arg2[%c0_1, %c0_2, %c0_3] : memref<8x50x32xf32, #tpu.memory_space<vmem>>, vector<1x50x32xf32>
    %12 = vector.shape_cast %11 : vector<1x50x32xf32> to vector<50x32xf32>
    %cst = arith.constant dense<0.000000e+00> : vector<16x32xf32>
    %13 = tpu.matmul %10, %12, %cst {dimension_numbers = #tpu.dot_dimension_numbers<[1], [0], [0], [1], [0, 0, 1, 1], [], []>, precision = #tpu.contract_precision<fp32>} : vector<16x50xf32>, vector<50x32xf32>, vector<16x32xf32> -> vector<16x32xf32>
    %c0_4 = arith.constant 0 : index
    %c0_5 = arith.constant 0 : index
    %14 = vector.load %arg3[%c0_4, %c0_5] : memref<16x256xf32, #tpu.memory_space<vmem>>, vector<16x32xf32>
    tpu.vector_store %arg3[%c0_4, %c0_5], %13 {strides = array<i32>} : memref<16x256xf32, #tpu.memory_space<vmem>>, vector<16x32xf32>,
    %15 = vector.extract_strided_slice %4 {offsets = [0, 1], sizes = [16, 1], strides = [1, 1]} : vector<16x8xi32> to vector<16x1xi32>
    %16 = vector.broadcast %15 : vector<16x1xi32> to vector<16x50xi32>
    %17 = arith.cmpi eq, %16, %5 : vector<16x50xi32>
    %18 = arith.extui %17 : vector<16x50xi1> to vector<16x50xi32>
    %19 = arith.sitofp %18 : vector<16x50xi32> to vector<16x50xf32>
    %c1 = arith.constant 1 : index
    %c0_6 = arith.constant 0 : index
    %c0_7 = arith.constant 0 : index
    %20 = vector.load %arg2[%c1, %c0_6, %c0_7] : memref<8x50x32xf32, #tpu.memory_space<vmem>>, vector<1x50x32xf32>
    %21 = vector.shape_cast %20 : vector<1x50x32xf32> to vector<50x32xf32>
    %cst_8 = arith.constant dense<0.000000e+00> : vector<16x32xf32>
    %22 = tpu.matmul %19, %21, %cst_8 {dimension_numbers = #tpu.dot_dimension_numbers<[1], [0], [0], [1], [0, 0, 1, 1], [], []>, precision = #tpu.contract_precision<fp32>} : vector<16x50xf32>, vector<50x32xf32>, vector<16x32xf32> -> vector<16x32xf32>
    %c0_9 = arith.constant 0 : index
    %c32 = arith.constant 32 : index
    %23 = vector.load %arg3[%c0_9, %c32] : memref<16x256xf32, #tpu.memory_space<vmem>>, vector<16x32xf32>
    tpu.vector_store %arg3[%c0_9, %c32], %22 {strides = array<i32>} : memref<16x256xf32, #tpu.memory_space<vmem>>, vector<16x32xf32>,
    %24 = vector.extract_strided_slice %4 {offsets = [0, 2], sizes = [16, 1], strides = [1, 1]} : vector<16x8xi32> to vector<16x1xi32>
    %25 = vector.broadcast %24 : vector<16x1xi32> to vector<16x50xi32>
    %26 = arith.cmpi eq, %25, %5 : vector<16x50xi32>
    %27 = arith.extui %26 : vector<16x50xi1> to vector<16x50xi32>
    %28 = arith.sitofp %27 : vector<16x50xi32> to vector<16x50xf32>
    %c2 = arith.constant 2 : index
    %c0_10 = arith.constant 0 : index
    %c0_11 = arith.constant 0 : index
    %29 = vector.load %arg2[%c2, %c0_10, %c0_11] : memref<8x50x32xf32, #tpu.memory_space<vmem>>, vector<1x50x32xf32>
    %30 = vector.shape_cast %29 : vector<1x50x32xf32> to vector<50x32xf32>
    %cst_12 = arith.constant dense<0.000000e+00> : vector<16x32xf32>
    %31 = tpu.matmul %28, %30, %cst_12 {dimension_numbers = #tpu.dot_dimension_numbers<[1], [0], [0], [1], [0, 0, 1, 1], [], []>, precision = #tpu.contract_precision<fp32>} : vector<16x50xf32>, vector<50x32xf32>, vector<16x32xf32> -> vector<16x32xf32>
    %c0_13 = arith.constant 0 : index
    %c64 = arith.constant 64 : index
    %32 = vector.load %arg3[%c0_13, %c64] : memref<16x256xf32, #tpu.memory_space<vmem>>, vector<16x32xf32>
    tpu.vector_store %arg3[%c0_13, %c64], %31 {strides = array<i32>} : memref<16x256xf32, #tpu.memory_space<vmem>>, vector<16x32xf32>,
    %33 = vector.extract_strided_slice %4 {offsets = [0, 3], sizes = [16, 1], strides = [1, 1]} : vector<16x8xi32> to vector<16x1xi32>
    %34 = vector.broadcast %33 : vector<16x1xi32> to vector<16x50xi32>
    %35 = arith.cmpi eq, %34, %5 : vector<16x50xi32>
    %36 = arith.extui %35 : vector<16x50xi1> to vector<16x50xi32>
    %37 = arith.sitofp %36 : vector<16x50xi32> to vector<16x50xf32>
    %c3 = arith.constant 3 : index
    %c0_14 = arith.constant 0 : index
    %c0_15 = arith.constant 0 : index
    %38 = vector.load %arg2[%c3, %c0_14, %c0_15] : memref<8x50x32xf32, #tpu.memory_space<vmem>>, vector<1x50x32xf32>
    %39 = vector.shape_cast %38 : vector<1x50x32xf32> to vector<50x32xf32>
    %cst_16 = arith.constant dense<0.000000e+00> : vector<16x32xf32>
    %40 = tpu.matmul %37, %39, %cst_16 {dimension_numbers = #tpu.dot_dimension_numbers<[1], [0], [0], [1], [0, 0, 1, 1], [], []>, precision = #tpu.contract_precision<fp32>} : vector<16x50xf32>, vector<50x32xf32>, vector<16x32xf32> -> vector<16x32xf32>
    %c0_17 = arith.constant 0 : index
    %c96 = arith.constant 96 : index
    %41 = vector.load %arg3[%c0_17, %c96] : memref<16x256xf32, #tpu.memory_space<vmem>>, vector<16x32xf32>
    tpu.vector_store %arg3[%c0_17, %c96], %40 {strides = array<i32>} : memref<16x256xf32, #tpu.memory_space<vmem>>, vector<16x32xf32>,
    %42 = vector.extract_strided_slice %4 {offsets = [0, 4], sizes = [16, 1], strides = [1, 1]} : vector<16x8xi32> to vector<16x1xi32>
    %43 = vector.broadcast %42 : vector<16x1xi32> to vector<16x50xi32>
    %44 = arith.cmpi eq, %43, %5 : vector<16x50xi32>
    %45 = arith.extui %44 : vector<16x50xi1> to vector<16x50xi32>
    %46 = arith.sitofp %45 : vector<16x50xi32> to vector<16x50xf32>
    %c4 = arith.constant 4 : index
    %c0_18 = arith.constant 0 : index
    %c0_19 = arith.constant 0 : index
    %47 = vector.load %arg2[%c4, %c0_18, %c0_19] : memref<8x50x32xf32, #tpu.memory_space<vmem>>, vector<1x50x32xf32>
    %48 = vector.shape_cast %47 : vector<1x50x32xf32> to vector<50x32xf32>
    %cst_20 = arith.constant dense<0.000000e+00> : vector<16x32xf32>
    %49 = tpu.matmul %46, %48, %cst_20 {dimension_numbers = #tpu.dot_dimension_numbers<[1], [0], [0], [1], [0, 0, 1, 1], [], []>, precision = #tpu.contract_precision<fp32>} : vector<16x50xf32>, vector<50x32xf32>, vector<16x32xf32> -> vector<16x32xf32>
    %c0_21 = arith.constant 0 : index
    %c128 = arith.constant 128 : index
    %50 = vector.load %arg3[%c0_21, %c128] : memref<16x256xf32, #tpu.memory_space<vmem>>, vector<16x32xf32>
    tpu.vector_store %arg3[%c0_21, %c128], %49 {strides = array<i32>} : memref<16x256xf32, #tpu.memory_space<vmem>>, vector<16x32xf32>,
    %51 = vector.extract_strided_slice %4 {offsets = [0, 5], sizes = [16, 1], strides = [1, 1]} : vector<16x8xi32> to vector<16x1xi32>
    %52 = vector.broadcast %51 : vector<16x1xi32> to vector<16x50xi32>
    %53 = arith.cmpi eq, %52, %5 : vector<16x50xi32>
    %54 = arith.extui %53 : vector<16x50xi1> to vector<16x50xi32>
    %55 = arith.sitofp %54 : vector<16x50xi32> to vector<16x50xf32>
    %c5 = arith.constant 5 : index
    %c0_22 = arith.constant 0 : index
    %c0_23 = arith.constant 0 : index
    %56 = vector.load %arg2[%c5, %c0_22, %c0_23] : memref<8x50x32xf32, #tpu.memory_space<vmem>>, vector<1x50x32xf32>
    %57 = vector.shape_cast %56 : vector<1x50x32xf32> to vector<50x32xf32>
    %cst_24 = arith.constant dense<0.000000e+00> : vector<16x32xf32>
    %58 = tpu.matmul %55, %57, %cst_24 {dimension_numbers = #tpu.dot_dimension_numbers<[1], [0], [0], [1], [0, 0, 1, 1], [], []>, precision = #tpu.contract_precision<fp32>} : vector<16x50xf32>, vector<50x32xf32>, vector<16x32xf32> -> vector<16x32xf32>
    %c0_25 = arith.constant 0 : index
    %c160 = arith.constant 160 : index
    %59 = vector.load %arg3[%c0_25, %c160] : memref<16x256xf32, #tpu.memory_space<vmem>>, vector<16x32xf32>
    tpu.vector_store %arg3[%c0_25, %c160], %58 {strides = array<i32>} : memref<16x256xf32, #tpu.memory_space<vmem>>, vector<16x32xf32>,
    %60 = vector.extract_strided_slice %4 {offsets = [0, 6], sizes = [16, 1], strides = [1, 1]} : vector<16x8xi32> to vector<16x1xi32>
    %61 = vector.broadcast %60 : vector<16x1xi32> to vector<16x50xi32>
    %62 = arith.cmpi eq, %61, %5 : vector<16x50xi32>
    %63 = arith.extui %62 : vector<16x50xi1> to vector<16x50xi32>
    %64 = arith.sitofp %63 : vector<16x50xi32> to vector<16x50xf32>
    %c6 = arith.constant 6 : index
    %c0_26 = arith.constant 0 : index
    %c0_27 = arith.constant 0 : index
    %65 = vector.load %arg2[%c6, %c0_26, %c0_27] : memref<8x50x32xf32, #tpu.memory_space<vmem>>, vector<1x50x32xf32>
    %66 = vector.shape_cast %65 : vector<1x50x32xf32> to vector<50x32xf32>
    %cst_28 = arith.constant dense<0.000000e+00> : vector<16x32xf32>
    %67 = tpu.matmul %64, %66, %cst_28 {dimension_numbers = #tpu.dot_dimension_numbers<[1], [0], [0], [1], [0, 0, 1, 1], [], []>, precision = #tpu.contract_precision<fp32>} : vector<16x50xf32>, vector<50x32xf32>, vector<16x32xf32> -> vector<16x32xf32>
    %c0_29 = arith.constant 0 : index
    %c192 = arith.constant 192 : index
    %68 = vector.load %arg3[%c0_29, %c192] : memref<16x256xf32, #tpu.memory_space<vmem>>, vector<16x32xf32>
    tpu.vector_store %arg3[%c0_29, %c192], %67 {strides = array<i32>} : memref<16x256xf32, #tpu.memory_space<vmem>>, vector<16x32xf32>,
    %69 = vector.extract_strided_slice %4 {offsets = [0, 7], sizes = [16, 1], strides = [1, 1]} : vector<16x8xi32> to vector<16x1xi32>
    %70 = vector.broadcast %69 : vector<16x1xi32> to vector<16x50xi32>
    %71 = arith.cmpi eq, %70, %5 : vector<16x50xi32>
    %72 = arith.extui %71 : vector<16x50xi1> to vector<16x50xi32>
    %73 = arith.sitofp %72 : vector<16x50xi32> to vector<16x50xf32>
    %c7 = arith.constant 7 : index
    %c0_30 = arith.constant 0 : index
    %c0_31 = arith.constant 0 : index
    %74 = vector.load %arg2[%c7, %c0_30, %c0_31] : memref<8x50x32xf32, #tpu.memory_space<vmem>>, vector<1x50x32xf32>
    %75 = vector.shape_cast %74 : vector<1x50x32xf32> to vector<50x32xf32>
    %cst_32 = arith.constant dense<0.000000e+00> : vector<16x32xf32>
    %76 = tpu.matmul %73, %75, %cst_32 {dimension_numbers = #tpu.dot_dimension_numbers<[1], [0], [0], [1], [0, 0, 1, 1], [], []>, precision = #tpu.contract_precision<fp32>} : vector<16x50xf32>, vector<50x32xf32>, vector<16x32xf32> -> vector<16x32xf32>
    %c0_33 = arith.constant 0 : index
    %c224 = arith.constant 224 : index
    %77 = vector.load %arg3[%c0_33, %c224] : memref<16x256xf32, #tpu.memory_space<vmem>>, vector<16x32xf32>
    tpu.vector_store %arg3[%c0_33, %c224], %76 {strides = array<i32>} : memref<16x256xf32, #tpu.memory_space<vmem>>, vector<16x32xf32>,
    return
  }
  func.func @transform_0(%arg0: i32) -> (i32, i32) {
    %c0_i32 = arith.constant 0 : i32
    %c0_i32_0 = arith.constant 0 : i32
    return %arg0, %c0_i32 : i32, i32
  }
  func.func @transform_1(%arg0: i32) -> (i32, i32, i32) {
    %c0_i32 = arith.constant 0 : i32
    %c0_i32_0 = arith.constant 0 : i32
    %c0_i32_1 = arith.constant 0 : i32
    %c0_i32_2 = arith.constant 0 : i32
    return %c0_i32, %c0_i32_0, %c0_i32_1 : i32, i32, i32
  }
  func.func @transform_2(%arg0: i32) -> (i32, i32) {
    %c0_i32 = arith.constant 0 : i32
    %c0_i32_0 = arith.constant 0 : i32
    return %arg0, %c0_i32 : i32, i32
  }
}

</mosaic_0001>

<bundles_post_ra>
// kernel: tpu_custom_call.1
= control target key start
LH: loop header
LB: loop body
LE: loop exit
PB: predicated region body
PF: predicated region fallthrough
CT: control target
= control target key end

     0   :  { %v6946_v2 = vmov 1   ;;  %v6947_v3 = vmov 0   ;;  %s8397_s0 = inlined_call_operand.vmem [shape: s32[16,8], index: 0, kind: input, shape index: {}]   ;;  %s8398_s1 = inlined_call_operand.vmem [shape: f32[8,50,32], index: 1, kind: input, shape index: {}]   ;;  %s8399_s2 = inlined_call_operand.hbm [shape: f32[16,256], index: 2, kind: output, shape index: {}]  }
   0x1   :  { %v12_v0 = vld [vmem:[%s8397_s0] sm:$0xff]  ;;  %v13_v1 = vld [vmem:[%s8397_s0 + $0x8] sm:$0xff]  ;;  %6910 = vset.pattern.permute.xlu1 %v6946_v2  ;;  %6909 = vset.pattern.permute.xlu0 %v6947_v3  ;;  %v4887_v6 = vld [vmem:[%s8398_s1 + $0x38] sm:$0xff] }
   0x2   :  { %vm14_vm0 = vcmp.gt.s32.totalorder %v12_v0, 0  ;;  %vm16_vm1 = vcmp.gt.s32.totalorder %v13_v1, 0  ;;  %v36_v4 = vld [vmem:[%s8398_s1] sm:$0xff]  ;;  %v37_v5 = vld [vmem:[%s8398_s1 + $0x8] sm:$0xff]  ;;  %v654_v12 = vand.u32 4294901760, %v4887_v6 }
   0x3   :  { %v15_v7 = vsel %vm14_vm0, %v12_v0, 0  ;;  %v17_v8 = vsel %vm16_vm1, %v13_v1, 0  ;;  %v55_v9 = vand.u32 4294901760, %v36_v4  ;;  %v58_v10 = vand.u32 4294901760, %v37_v5  ;;  %v4888_v11 = vld [vmem:[%s8398_s1 + $0x40] sm:$0xff] }
   0x4   :  { %vm18_vm2 = vcmp.lt.s32.totalorder %v15_v7, 49  ;;  %vm20_vm3 = vcmp.lt.s32.totalorder %v17_v8, 49 }
   0x5   :  { %7 = vsyncpa [#allocation3], 0  ;;  %v6994_v13 = vsel %vm18_vm2, %v15_v7, 49  ;;  %v6996_v14 = vpack.c.bf16 %v58_v10, %v55_v9  ;;  %v657_v15 = vand.u32 4294901760, %v4888_v11  ;;  %v7001_v16 = vld [vmem:[%s8398_s1 + $0x10] sm:$0xff]  ;;  %v7006_v17 = vld [vmem:[%s8398_s1 + $0x18] sm:$0xff]  ;;  %v7054_v35 = vsub.f32 %v36_v4, %v55_v9 }
   0x6   :  { %v7011_v18 = vld [vmem:[%s8398_s1 + $0x48] sm:$0xff]  ;;  %625 = vperm.xlu1 %6910, %v6994_v13   ;;  %25 = vperm.xlu0 %6909, %v6994_v13   ;;  %v61_v19 = vand.u32 4294901760, %v7001_v16  ;;  %v64_v20 = vand.u32 4294901760, %v7006_v17  ;;  %v4890_v21 = vld [vmem:[%s8398_s1 + $0x50] sm:$0xff]  ;;  %v7021_v23 = vsel %vm20_vm3, %v17_v8, 49  ;;  %v40_v28 = vld [vmem:[%s8398_s1 + $0x20] sm:$0xff]  ;;  %v7059_v37 = vsub.f32 %v37_v5, %v58_v10 }
   0x7   :  { %v660_v22 = vand.u32 4294901760, %v7011_v18  ;;  %6239 = vmatprep.subr.bf16.mxu0 %v6996_v14  ;;  %v7024_v24 = vpack.c.bf16 %v657_v15, %v654_v12  ;;  %v663_v25 = vand.u32 4294901760, %v4890_v21  ;;  %v7038_v29 = vld [vmem:[%s8398_s1 + $0x28] sm:$0xff]  ;;  %v7043_v30 = vld [vmem:[%s8398_s1 + $0x58] sm:$0xff]  ;;  %v67_v31 = vand.u32 4294901760, %v40_v28  ;;  %v7051_v33 = vld [vmem:[%s8398_s1 + $0x60] sm:$0xff] }
   0x8   :  { %6241 = vmatpush3.bf16.msra.mxu0 %v6996_v14  ;;  %v7027_v26 = vpack.c.bf16 %v64_v20, %v61_v19  ;;  %v70_v32 = vand.u32 4294901760, %v7038_v29  ;;  %v666_v34 = vand.u32 4294901760, %v7043_v30  ;;  %v669_v36 = vand.u32 4294901760, %v7051_v33  ;;  %v42_v47 = vld [vmem:[%s8398_s1 + $0x30] sm:$0x3]  ;;  %s6956_s9 = smov 64  }
   0x9   :  { %6311 = vmatprep.subr.bf16.mxu1 %v7024_v24  ;;  %v7030_v27 = vpack.c.bf16 %v663_v25, %v660_v22  ;;  %v7061_v38 = vsub.f32 %v4887_v6, %v654_v12  ;;  %v7063_v39 = vsub.f32 %v4888_v11, %v657_v15  ;;  %v149_v41 = vand.u32 4294901760, %v7054_v35  ;;  %v4893_v48 = vld [vmem:[%s8398_s1 + $0x68] sm:$0x3]  ;;  %s6957_s10 = smov 96   ;;  %s6958_s11 = smov [#allocation2]  }
   0xa   :  { %628 = vperm.xlu1 %6910, %v7021_v23   ;;  %28 = vperm.xlu0 %6909, %v7021_v23   ;;  %v7067_v40 = vpack.c.bf16 %v70_v32, %v67_v31  ;;  %v7074_v42 = vpack.c.bf16 %v669_v36, %v666_v34  ;;  %v156_v43 = vand.u32 4294901760, %v7059_v37  ;;  %v6948_v46 = vmov 2   ;;  %s4866_s12 = sshll.u32 %s6958_s11, 4  ;;  %s4867_s12 = int_to_ptr.vmem [resolvable:$true] %s4866_s12 }
   0xb   :  { %6313 = vmatpush3.bf16.msra.mxu1 %v7024_v24  ;;  %6243 = vmatprep.subr.bf16.mxu0 %v7027_v26  ;;  %v748_v44 = vand.u32 4294901760, %v7061_v38  ;;  %v755_v45 = vand.u32 4294901760, %v7063_v39  ;;  %vm50_vm4 = vcmask 1041408   ;;  %v150_v49 = vsub.f32 %v7054_v35, %v149_v41  ;;  %s6922_s13 = scalar_lea.vmem %s4867_s12, 512  ;;  %p6927_p1 = scmp.lt.s32.totalorder %s4867_s12, %s4867_s12 }
   0xc   :  { %6315 = vmatprep.subr.bf16.mxu1 %v7030_v27  ;;  %6245 = vmatpush3.bf16.msra.mxu0 %v7027_v26  ;;  %v7091_v50 = vsel %vm50_vm4, %v42_v47, 0  ;;  %v7094_v51 = vsel %vm50_vm4, %v4893_v48, 0  ;;  %v157_v52 = vsub.f32 %v7059_v37, %v156_v43  ;;  %v7113_v59 = vsub.f32 %v7001_v16, %v61_v19  ;;  %p6923_p0 = scmp.ne.s32.totalorder %s4867_s12, %s6922_s13  ;;  %p6928_p2 = scmp.lt.s32.totalorder %s6922_s13, %s6922_s13 }
   0xd   :  { %v749_v53 = vsub.f32 %v7061_v38, %v748_v44  ;;  %6247 = vmatprep.subr.bf16.mxu0 %v7067_v40  ;;  %v7105_v54 = vand.u32 4294901760, %v7091_v50  ;;  %v151_v55 = vand.u32 4294901760, %v150_v49  ;;  %v756_v56 = vsub.f32 %v7063_v39, %v755_v45 }
   0xe   :  { %6912 = vset.pattern.permute.xlu1 %v6948_v46  ;;  %6911 = vset.pattern.permute.xlu0 %v6948_v46  ;;  %v158_v57 = vand.u32 4294901760, %v157_v52  ;;  %v7116_v60 = vsub.f32 %v7006_v17, %v64_v20  ;;  %v7120_v61 = vand.u32 4294901760, %v7094_v51  ;;  %v7123_v63 = vsub.f32 %v7011_v18, %v660_v22  ;;  %p6929_p3 = por %p6928_p2, %p6927_p1 }
   0xf   :  { %1235 = vperm.xlu1 %6912, %v7021_v23   ;;  %1232 = vperm.xlu0 %6911, %v6994_v13   ;;  %v750_v58 = vand.u32 4294901760, %v749_v53  ;;  %v757_v62 = vand.u32 4294901760, %v756_v56  ;;  %v7125_v0 = vsub.f32 %v4890_v21, %v663_v25  ;;  %v6949_v1 = vmov 3  }
  0x10   :  { %6317 = vmatpush3.bf16.msra.mxu1 %v7030_v27  ;;  %6249 = vmatpush3.bf16.msra.mxu0 %v7067_v40  ;;  %v7127_v2 = vpack.c.bf16 %v158_v57, %v151_v55  ;;  %v163_v3 = vand.u32 4294901760, %v7113_v59  ;;  %v170_v4 = vand.u32 4294901760, %v7116_v60  ;;  %v176_v5 = vsub.f32 %v40_v28, %v67_v31  ;;  %p6930_p4 = pnand %p6929_p3, %p6923_p0 }
  0x11   :  { %6319 = vmatprep.subr.bf16.mxu1 %v7074_v42  ;;  %5434 = vmatprep.subr.mxu0 %v7105_v54  ;;  %v7133_v6 = vpack.c.bf16 %v757_v62, %v750_v58  ;;  %v762_v7 = vand.u32 4294901760, %v7123_v63  ;;  %v769_v8 = vand.u32 4294901760, %v7125_v0  ;;  %v183_v9 = vsub.f32 %v7038_v29, %v70_v32 }
  0x12   :  { %v164_v10 = vsub.f32 %v7113_v59, %v163_v3  ;;  %v171_v11 = vsub.f32 %v7116_v60, %v170_v4  ;;  %v177_v12 = vand.u32 4294901760, %v176_v5  ;;  %v775_v15 = vsub.f32 %v7043_v30, %v666_v34 }
  0x13   :  { %6913 = vset.pattern.permute.xlu1 %v6949_v1  ;;  %6914 = vset.pattern.permute.xlu0 %v6949_v1  ;;  %v763_v16 = vsub.f32 %v7123_v63, %v762_v7  ;;  %v770_v17 = vsub.f32 %v7125_v0, %v769_v8  ;;  %v184_v18 = vand.u32 4294901760, %v183_v9  ;;  %v782_v19 = vsub.f32 %v7051_v33, %v669_v36 }
  0x14   :  { %1839 = vperm.xlu1 %6913, %v6994_v13   ;;  %1842 = vperm.xlu0 %6914, %v7021_v23   ;;  %v165_v20 = vand.u32 4294901760, %v164_v10  ;;  %v172_v21 = vand.u32 4294901760, %v171_v11  ;;  %v178_v22 = vsub.f32 %v176_v5, %v177_v12  ;;  %v776_v25 = vand.u32 4294901760, %v775_v15 }
  0x15   :  { %6321 = vmatpush3.bf16.msra.mxu1 %v7074_v42  ;;  %5435 = vmatpush3.msra.mxu0 %v7105_v54  ;;  %v764_v28 = vand.u32 4294901760, %v763_v16  ;;  %v771_v29 = vand.u32 4294901760, %v770_v17  ;;  %v185_v30 = vsub.f32 %v183_v9, %v184_v18  ;;  %v783_v31 = vand.u32 4294901760, %v782_v19 }
  0x16   :  { %5536 = vmatprep.subr.mxu1 %v7120_v61  ;;  %6251 = vmatprep.subr.bf16.mxu0 %v7127_v2  ;;  %v7153_v32 = vpack.c.bf16 %v172_v21, %v165_v20  ;;  %v179_v34 = vand.u32 4294901760, %v178_v22  ;;  %v777_v46 = vsub.f32 %v775_v15, %v776_v25  ;;  %v7164_v55 = vpack.c.bf16 %v7059_v37, %v7054_v35 }
  0x17   :  { %v7156_v47 = vpack.c.bf16 %v771_v29, %v764_v28  ;;  %v186_v48 = vand.u32 4294901760, %v185_v30  ;;  %v784_v33 = vsub.f32 %v782_v19, %v783_v31  ;;  %v7168_v56 = vpack.c.bf16 %v7063_v39, %v7061_v38 }
  0x18   :  { %v778_v36 = vand.u32 4294901760, %v777_v46  ;;  %v7172_v57 = vpack.c.bf16 %v7116_v60, %v7113_v59  ;;  %v6950_v58 = vmov 4   ;;  %v7176_v62 = vpack.c.bf16 %v7125_v0, %v7123_v63 }
  0x19   :  { %5537 = vmatpush3.msra.mxu1 %v7120_v61  ;;  %v7158_v49 = vpack.c.bf16 %v186_v48, %v179_v34  ;;  %v785_v52 = vand.u32 4294901760, %v784_v33  ;;  %6915 = vset.pattern.permute.xlu1 %v6950_v58  ;;  %v7179_v1 = vpack.c.bf16 %v183_v9, %v176_v5  ;;  %v7181_v10 = vpack.c.bf16 %v782_v19, %v775_v15 }
  0x1a   :  { %6323 = vmatprep.subr.bf16.mxu1 %v7133_v6  ;;  %2446 = vperm.xlu1 %6915, %v6994_v13   ;;  %v6951_v11 = vmov 5   ;;  %v7190_v59 = vpack.c.bf16 %v156_v43, %v149_v41  ;;  %v7196_v60 = vpack.c.bf16 %v755_v45, %v748_v44  ;;  %v7198_v63 = vpack.c.bf16 %v170_v4, %v163_v3 }
  0x1b   :  { %v7160_v53 = vpack.c.bf16 %v785_v52, %v778_v36  ;;  %6916 = vset.pattern.permute.xlu0 %v6951_v11  ;;  %v7200_v0 = vpack.c.bf16 %v769_v8, %v762_v7  ;;  %v7202_v5 = vpack.c.bf16 %v184_v18, %v177_v12  ;;  %v7204_v9 = vpack.c.bf16 %v783_v31, %v776_v25 }
  0x1c   :  { %3044 = vperm.xlu0 %6916, %v6994_v13   ;;  %v22_v15 = vlaneseq  ;;  %v6952_v37 = vmov 6   ;;  %vm43_vm5 = vcmask 408576   ;;  %v8400_v41 = vmov 0.0  }
  0x1d   :  { %v6954_v4 = vmov 7   ;;  %v190_v30 = vsub.f32 %v7091_v50, %v7105_v54  ;;  %v789_v31 = vsub.f32 %v7094_v51, %v7120_v61 }
  0x1e   :  { %2449 = vperm.xlu1 %6915, %v7021_v23   ;;  %v7206_v35 = vand.u32 127, %v22_v15 }
  0x1f   :  { %v7264_v58 = vand.u32 4294901760, %v190_v30  ;;  %v7266_v51 = vand.u32 4294901760, %v789_v31 }
  0x20   :  { %6919 = vset.pattern.permute.xlu0 %v6952_v37 }
  0x21   :  { %3653 = vperm.xlu0 %6919, %v7021_v23   ;;  %v791_v15 = vsub.f32 %v789_v31, %v7266_v51 }
  0x22   :  { %6917 = vset.pattern.permute.xlu1 %v6951_v11  ;;  %v192_v11 = vsub.f32 %v190_v30, %v7264_v58 }
  0x23   :  { %3047 = vperm.xlu1 %6917, %v7021_v23  }
  0x25   :  { %6921 = vset.pattern.permute.xlu0 %v6954_v4 }
  0x27   :  { %6918 = vset.pattern.permute.xlu1 %v6952_v37  ;;  %v4919_v37 = vld [vmem:[%s8398_s1 + $0xb8] sm:$0xff] }
  0x28   :  { %3650 = vperm.xlu1 %6918, %v6994_v13  }
  0x2c   :  { %6920 = vset.pattern.permute.xlu1 %v6954_v4  ;;  %v7417_v4 = vld [vmem:[%s8398_s1 + $0xc8] sm:$0xff] }
  0x2d   :  { %4256 = vperm.xlu1 %6920, %v6994_v13  }
  0x31   :  { %4259 = vperm.xlu1 %6920, %v7021_v23  }
  0x85   :  { %v626_v38 = vpop.permute.xlu1 %625  ;;  %v26_v39 = vpop.permute.xlu0 %25 }
  0x86   :  { %vm630_vm6 = vcmp.eq.s32.totalorder %v626_v38, %v7206_v35  ;;  %vm30_vm7 = vcmp.eq.s32.totalorder %v26_v39, %v7206_v35  ;;  %v4920_v38 = vld [vmem:[%s8398_s1 + $0xc0] sm:$0xff] }
  0x87   :  { %v7213_v43 = vsel %vm630_vm6, 1.0, %v8400_v41  ;;  %v7216_v44 = vsel %vm30_vm7, 1.0, %v8400_v41 }
  0x88   :  { %v45_v45 = vsel %vm43_vm5, %v7216_v44, 0  ;;  %v645_v3 = vsel %vm43_vm5, %v7213_v43, 0 }
  0x89   :  { %v629_v7 = vpop.permute.xlu1 %628  ;;  %v29_v8 = vpop.permute.xlu0 %28  ;;  %v7222_v12 = vsub.f32 %v45_v45, %v45_v45  ;;  %v7224_v16 = vsub.f32 %v645_v3, %v645_v3  ;;  %v4906_v45 = vld [vmem:[%s8398_s1 + $0x90] sm:$0xff]  ;;  %v4907_v3 = vld [vmem:[%s8398_s1 + $0x98] sm:$0xff] }
  0x8a   :  { %vm631_vm8 = vcmp.eq.s32.totalorder %v629_v7, %v7206_v35  ;;  %vm31_vm9 = vcmp.eq.s32.totalorder %v29_v8, %v7206_v35  ;;  %v4922_v8 = vld [vmem:[%s8398_s1 + $0xd0] sm:$0xff] }
  0x8b   :  { %v7230_v17 = vsel %vm631_vm8, 1.0, %v8400_v41  ;;  %v7233_v18 = vsel %vm31_vm9, 1.0, %v8400_v41  ;;  %v128_v19 = vand.u32 4294901760, %v7222_v12  ;;  %v727_v20 = vand.u32 4294901760, %v7224_v16 }
  0x8c   :  { %v648_v21 = vsel %vm43_vm5, %v7230_v17, 0  ;;  %v48_v13 = vsel %vm43_vm5, %v7233_v18, 0  ;;  %vm1228_vm8 = vcmask 523520   ;;  %vm2442_vm9 = vcmask 1048320  }
  0x8d   :  { %v7241_v22 = vsub.f32 %v648_v21, %v648_v21  ;;  %v7243_v25 = vsub.f32 %v48_v13, %v48_v13  ;;  %v129_v28 = vsub.f32 %v7222_v12, %v128_v19  ;;  %v728_v29 = vsub.f32 %v7224_v16, %v727_v20 }
  0x8e   :  { %v1273_v13 = vand.u32 4294901760, %v4906_v45 }
  0x8f   :  { %v130_v34 = vand.u32 4294901760, %v129_v28  ;;  %v729_v46 = vand.u32 4294901760, %v728_v29  ;;  %v138_v48 = vand.u32 4294901760, %v7243_v25  ;;  %v737_v33 = vand.u32 4294901760, %v7241_v22 }
  0x90   :  { %v1883_v29 = vand.u32 4294901760, %v4922_v8 }
  0x91   :  { %5436 = vmatprep.mubr.f32.mxu0 %v130_v34  ;;  %5538 = vmatprep.mubr.f32.mxu1 %v729_v46  ;;  %v139_v36 = vsub.f32 %v7243_v25, %v138_v48  ;;  %v738_v23 = vsub.f32 %v7241_v22, %v737_v33 }
  0x93   :  { %v140_v50 = vand.u32 4294901760, %v139_v36  ;;  %v739_v52 = vand.u32 4294901760, %v738_v23 }
  0x95   :  { %5437 = vmatmul.mubr.f32.vlgmr.msra.gmra.mrb[0].mxu0 %v140_v50  ;;  %5539 = vmatmul.mubr.f32.vlgmr.msra.gmra.mrb[0].mxu1 %v739_v52 }
  0x96   :  { %6253 = vmatpush3.bf16.msra.mxu0 %v7127_v2  ;;  %6325 = vmatpush3.bf16.msra.mxu1 %v7133_v6  ;;  %v193_v2 = vand.u32 4294901760, %v192_v11  ;;  %v792_v6 = vand.u32 4294901760, %v791_v15  ;;  %v4908_v11 = vld [vmem:[%s8398_s1 + $0xa0] sm:$0x3] }
  0x97   :  { %5453 = vmatprep.mubr.msk.f32.mxu0 %vm43_vm5, %v7216_v44  ;;  %5555 = vmatprep.mubr.msk.f32.mxu1 %vm43_vm5, %v7213_v43 }
  0x98   :  { %6255 = vmatprep.subr.bf16.mxu0 %v7153_v32  ;;  %6327 = vmatprep.subr.bf16.mxu1 %v7156_v47 }
  0x9a   :  { %6257 = vmatpush3.bf16.msra.mxu0 %v7153_v32  ;;  %6329 = vmatpush3.bf16.msra.mxu1 %v7156_v47  ;;  %v7330_v32 = vpop.permute.xlu1 %1235 }
  0x9b   :  { %6259 = vmatprep.subr.bf16.mxu0 %v7158_v49  ;;  %6331 = vmatprep.subr.bf16.mxu1 %v7160_v53  ;;  %vm1238_vm13 = vcmp.eq.s32.totalorder %v7330_v32, %v7206_v35 }
  0x9c   :  { %v7439_v28 = vsel %vm1238_vm13, 1.0, %v8400_v41 }
  0x9d   :  { %v1255_v23 = vsel %vm43_vm5, %v7439_v28, 0 }
  0x9e   :  { %6261 = vmatpush3.bf16.msra.mxu0 %v7158_v49  ;;  %6333 = vmatpush3.bf16.msra.mxu1 %v7160_v53  ;;  %v1840_v47 = vpop.permute.xlu1 %1839  ;;  %v1233_v49 = vpop.permute.xlu0 %1232 }
  0x9f   :  { %5451 = vmatprep.subr.mxu0 %v193_v2  ;;  %5553 = vmatprep.subr.mxu1 %v792_v6  ;;  %vm1237_vm10 = vcmp.eq.s32.totalorder %v1233_v49, %v7206_v35  ;;  %vm1844_vm11 = vcmp.eq.s32.totalorder %v1840_v47, %v7206_v35  ;;  %v4923_v47 = vld [vmem:[%s8398_s1 + $0xd8] sm:$0x3] }
  0xa0   :  { %v7351_v53 = vsel %vm1237_vm10, 1.0, %v8400_v41 }
  0xa2   :  { %5452 = vmatpush3.msra.mxu0 %v193_v2  ;;  %5554 = vmatpush3.msra.mxu1 %v792_v6 }
  0xa3   :  { %5454 = vmatmul.mubr.msk.f32.vlgmr.msra.gmra.mrb[0].mxu0 %vm43_vm5, %v7233_v18  ;;  %6263 = vmatprep.subr.bf16.mxu0 %v7164_v55 }
  0xa4   :  { %5556 = vmatmul.mubr.msk.f32.vlgmr.msra.gmra.mrb[0].mxu1 %vm43_vm5, %v7230_v17  ;;  %6335 = vmatprep.subr.bf16.mxu1 %v7168_v56 }
  0xa5   :  { %6265 = vmatpush3.bf16.msra.mxu0 %v7164_v55  ;;  %5470 = vmatprep.mubr.f32.mxu0 %v7222_v12  ;;  %v7354_v55 = vsel %vm1844_vm11, 1.0, %v8400_v41 }
  0xa6   :  { %6337 = vmatpush3.bf16.msra.mxu1 %v7168_v56  ;;  %5572 = vmatprep.mubr.f32.mxu1 %v7224_v16  ;;  %v4902_v56 = vld [vmem:[%s8398_s1 + $0x70] sm:$0xff]  ;;  %v1874_v16 = vand.u32 4294901760, %v4919_v37 }
  0xa7   :  { %6267 = vmatprep.subr.bf16.mxu0 %v7172_v57  ;;  %6339 = vmatprep.subr.bf16.mxu1 %v7176_v62 }
  0xa8   :  { %v7489_v49 = vsub.f32 %v4919_v37, %v1874_v16 }
  0xa9   :  { %6269 = vmatpush3.bf16.msra.mxu0 %v7172_v57  ;;  %v4903_v57 = vld [vmem:[%s8398_s1 + $0x78] sm:$0xff] }
  0xaa   :  { %6341 = vmatpush3.bf16.msra.mxu1 %v7176_v62  ;;  %6271 = vmatprep.subr.bf16.mxu0 %v7179_v1  ;;  %v1252_v62 = vsel %vm43_vm5, %v7351_v53, 0 }
  0xab   :  { %6343 = vmatprep.subr.bf16.mxu1 %v7181_v10 }
  0xad   :  { %6273 = vmatpush3.bf16.msra.mxu0 %v7179_v1  ;;  %v1859_v1 = vsel %vm43_vm5, %v7354_v55, 0 }
  0xae   :  { %6345 = vmatpush3.bf16.msra.mxu1 %v7181_v10  ;;  %5468 = vmatprep.subr.mxu0 %v190_v30  ;;  %v1261_v10 = vand.u32 4294901760, %v4902_v56 }
  0xaf   :  { %5570 = vmatprep.subr.mxu1 %v789_v31 }
  0xb1   :  { %5469 = vmatpush3.msra.mxu0 %v190_v30 }
  0xb2   :  { %5571 = vmatpush3.msra.mxu1 %v789_v31  ;;  %5471 = vmatmul.mubr.f32.vlgmr.msra.gmra.mrb[0].mxu0 %v7243_v25  ;;  %v1880_v25 = vand.u32 4294901760, %v7417_v4 }
  0xb3   :  { %5573 = vmatmul.mubr.f32.vlgmr.msra.gmra.mrb[0].mxu1 %v7241_v22  ;;  %6347 = vmatprep.subr.bf16.mxu1 %v7024_v24  ;;  %v1276_v22 = vand.u32 4294901760, %v4907_v3 }
  0xb4   :  { %6275 = vmatprep.subr.bf16.mxu0 %v6996_v14  ;;  %5487 = vmatprep.mubr.f32.mxu0 %v128_v19  ;;  %v1877_v19 = vand.u32 4294901760, %v4920_v38 }
  0xb5   :  { %6277 = vmatpush3.bf16.msra.mxu0 %v6996_v14  ;;  %6349 = vmatpush3.bf16.msra.mxu1 %v7024_v24  ;;  %v7467_v52 = vpack.c.bf16 %v1276_v22, %v1273_v13 }
  0xb6   :  { %5589 = vmatprep.mubr.f32.mxu1 %v727_v20  ;;  %6279 = vmatprep.subr.bf16.mxu0 %v7027_v26  ;;  %v7465_v50 = vpack.c.bf16 %v1877_v19, %v1874_v16 }
  0xb7   :  { %6351 = vmatprep.subr.bf16.mxu1 %v7030_v27 }
  0xb9   :  { %6281 = vmatpush3.bf16.msra.mxu0 %v7027_v26  ;;  %6353 = vmatpush3.bf16.msra.mxu1 %v7030_v27 }
  0xba   :  { %6283 = vmatprep.subr.bf16.mxu0 %v7067_v40  ;;  %6355 = vmatprep.subr.bf16.mxu1 %v7074_v42 }
  0xbd   :  { %6285 = vmatpush3.bf16.msra.mxu0 %v7067_v40  ;;  %6357 = vmatpush3.bf16.msra.mxu1 %v7074_v42 }
  0xbe   :  { %5485 = vmatprep.subr.mxu0 %v7105_v54  ;;  %5587 = vmatprep.subr.mxu1 %v7120_v61 }
  0xc1   :  { %5486 = vmatpush3.msra.mxu0 %v7105_v54  ;;  %5588 = vmatpush3.msra.mxu1 %v7120_v61 }
  0xc2   :  { %5488 = vmatmul.mubr.f32.vlgmr.msra.gmra.mrb[0].mxu0 %v138_v48  ;;  %6287 = vmatprep.subr.bf16.mxu0 %v7190_v59 }
  0xc3   :  { %5590 = vmatmul.mubr.f32.vlgmr.msra.gmra.mrb[0].mxu1 %v737_v33  ;;  %6359 = vmatprep.subr.bf16.mxu1 %v7196_v60 }
  0xc4   :  { %6289 = vmatpush3.bf16.msra.mxu0 %v7190_v59  ;;  %5504 = vmatprep.mubr.msk.f32.mxu0 %vm43_vm5, %v7216_v44  ;;  %v1264_v59 = vand.u32 4294901760, %v4903_v57 }
  0xc5   :  { %6361 = vmatpush3.bf16.msra.mxu1 %v7196_v60  ;;  %5606 = vmatprep.mubr.msk.f32.mxu1 %vm43_vm5, %v7213_v43  ;;  %v7378_v60 = vsub.f32 %v1252_v62, %v1252_v62 }
  0xc6   :  { %6291 = vmatprep.subr.bf16.mxu0 %v7198_v63  ;;  %6363 = vmatprep.subr.bf16.mxu1 %v7200_v0  ;;  %v7405_v39 = vpack.c.bf16 %v1264_v59, %v1261_v10  ;;  %v7441_v30 = vsub.f32 %v4903_v57, %v1264_v59  ;;  %v7493_v57 = vsub.f32 %v1255_v23, %v1255_v23 }
  0xc7   :  { %v1334_v12 = vand.u32 4294901760, %v7378_v60  ;;  %v7506_v59 = vsub.f32 %v4906_v45, %v1273_v13 }
  0xc8   :  { %6293 = vmatpush3.bf16.msra.mxu0 %v7198_v63  ;;  %v4917_v63 = vld [vmem:[%s8398_s1 + $0xa8] sm:$0xff]  ;;  %v1362_v15 = vand.u32 4294901760, %v7441_v30  ;;  %v1344_v45 = vand.u32 4294901760, %v7493_v57 }
  0xc9   :  { %6365 = vmatpush3.bf16.msra.mxu1 %v7200_v0  ;;  %6295 = vmatprep.subr.bf16.mxu0 %v7202_v5  ;;  %v4918_v0 = vld [vmem:[%s8398_s1 + $0xb0] sm:$0xff] }
  0xca   :  { %6367 = vmatprep.subr.bf16.mxu1 %v7204_v9  ;;  %v1345_v23 = vsub.f32 %v7493_v57, %v1344_v45 }
  0xcc   :  { %6297 = vmatpush3.bf16.msra.mxu0 %v7202_v5  ;;  %v1843_v5 = vpop.permute.xlu0 %1842 }
  0xcd   :  { %6369 = vmatpush3.bf16.msra.mxu1 %v7204_v9  ;;  %5502 = vmatprep.subr.mxu0 %v7264_v58  ;;  %v4905_v9 = vld [vmem:[%s8398_s1 + $0x88] sm:$0xff]  ;;  %vm1845_vm12 = vcmp.eq.s32.totalorder %v1843_v5, %v7206_v35  ;;  %v7515_v5 = vsub.f32 %v7417_v4, %v1880_v25 }
  0xce   :  { %5604 = vmatprep.subr.mxu1 %v7266_v51  ;;  %v1270_v7 = vand.u32 4294901760, %v4905_v9  ;;  %v7434_v21 = vsel %vm1845_vm12, 1.0, %v8400_v41 }
  0xcf   :  { %v1862_v48 = vsel %vm43_vm5, %v7434_v21, 0 }
  0xd0   :  { %5503 = vmatpush3.msra.mxu0 %v7264_v58  ;;  %v7479_v6 = vsub.f32 %v4905_v9, %v1270_v7  ;;  %v7484_v32 = vsub.f32 %v1862_v48, %v1862_v48  ;;  %v1363_v9 = vsub.f32 %v7441_v30, %v1362_v15 }
  0xd1   :  { %5605 = vmatpush3.msra.mxu1 %v7266_v51  ;;  %5505 = vmatmul.mubr.msk.f32.vlgmr.msra.gmra.mrb[0].mxu0 %vm43_vm5, %v7233_v18  ;;  %v7472_v51 = vpack.c.bf16 %v1883_v29, %v1880_v25 }
  0xd2   :  { %6299 = vmatprep.subr.bf16.mxu0 %v6996_v14  ;;  %5607 = vmatmul.mubr.msk.f32.vlgmr.msra.gmra.mrb[0].mxu1 %vm43_vm5, %v7230_v17  ;;  %v8406_v37 = vand.u32 4294901760, %v7484_v32 }
  0xd3   :  { %6371 = vmatprep.subr.bf16.mxu1 %v7024_v24  ;;  %6301 = vmatpush3.bf16.msra.mxu0 %v6996_v14  ;;  %v7389_v14 = vsub.f32 %v1859_v1, %v1859_v1  ;;  %v1258_v1 = vsel %vm50_vm4, %v4908_v11, 0 }
  0xd4   :  { %5521 = vmatprep.mubr.msk.f32.mxu0 %vm43_vm5, %v7216_v44  ;;  %6373 = vmatpush3.bf16.msra.mxu1 %v7024_v24  ;;  %v4904_v24 = vld [vmem:[%s8398_s1 + $0x80] sm:$0xff]  ;;  %v1871_v44 = vand.u32 4294901760, %v4918_v0 }
  0xd5   :  { %5623 = vmatprep.mubr.msk.f32.mxu1 %vm43_vm5, %v7213_v43  ;;  %6303 = vmatprep.subr.bf16.mxu0 %v7027_v26  ;;  %v1868_v43 = vand.u32 4294901760, %v4917_v63  ;;  %v1941_v20 = vand.u32 4294901760, %v7389_v14 }
  0xd6   :  { %6375 = vmatprep.subr.bf16.mxu1 %v7030_v27  ;;  %v7461_v36 = vsub.f32 %v4918_v0, %v1871_v44  ;;  %v8407_v0 = vand.u32 4294901760, %v7479_v6 }
  0xd7   :  { %6305 = vmatpush3.bf16.msra.mxu0 %v7027_v26  ;;  %v1267_v26 = vand.u32 4294901760, %v4904_v24  ;;  %v7443_v31 = vsub.f32 %v4917_v63, %v1868_v43  ;;  %v7447_v34 = vpack.c.bf16 %v1871_v44, %v1868_v43  ;;  %v1942_v33 = vsub.f32 %v7389_v14, %v1941_v20 }
  0xd8   :  { %6377 = vmatpush3.bf16.msra.mxu1 %v7030_v27  ;;  %6307 = vmatprep.subr.bf16.mxu0 %v7067_v40  ;;  %v7429_v27 = vsub.f32 %v4902_v56, %v1261_v10  ;;  %v7491_v56 = vsub.f32 %v4920_v38, %v1877_v19  ;;  %v1969_v62 = vand.u32 4294901760, %v7461_v36  ;;  %v1865_v63 = vsel %vm50_vm4, %v4923_v47, 0 }
  0xd9   :  { %6379 = vmatprep.subr.bf16.mxu1 %v7074_v42  ;;  %v7449_v46 = vpack.c.bf16 %v1270_v7, %v1267_v26  ;;  %v7469_v58 = vsub.f32 %v4904_v24, %v1267_v26  ;;  %v1962_v2 = vand.u32 4294901760, %v7443_v31  ;;  %v7517_v24 = vsub.f32 %v4922_v8, %v1883_v29 }
  0xda   :  { %v8405_v38 = vand.u32 4294901760, %v7489_v49  ;;  %v8404_v43 = vand.u32 4294901760, %v7491_v56  ;;  %v7526_v44 = vand.u32 4294901760, %v1258_v1  ;;  %v1970_v4 = vsub.f32 %v7461_v36, %v1969_v62 }
  0xdb   :  { %6309 = vmatpush3.bf16.msra.mxu0 %v7067_v40  ;;  %v1335_v40 = vsub.f32 %v7378_v60, %v1334_v12  ;;  %v8410_v10 = vand.u32 4294901760, %v7469_v58  ;;  %v7536_v26 = vand.u32 4294901760, %v1865_v63  ;;  %v8403_v8 = vand.u32 4294901760, %v7506_v59 }
  0xdc   :  { %6381 = vmatpush3.bf16.msra.mxu1 %v7074_v42  ;;  %5519 = vmatprep.subr.mxu0 %v7105_v54  ;;  %v1355_v42 = vand.u32 4294901760, %v7429_v27  ;;  %v1377_v13 = vsub.f32 %v7479_v6, %v8407_v0  ;;  %v8409_v25 = vand.u32 4294901760, %v7517_v24  ;;  %v1364_v29 = vand.u32 4294901760, %v1363_v9 }
  0xdd   :  { %5621 = vmatprep.subr.mxu1 %v7120_v61  ;;  %v1370_v7 = vsub.f32 %v7469_v58, %v8410_v10  ;;  %v1977_v48 = vsub.f32 %v7489_v49, %v8405_v38  ;;  %v7571_v9 = vsub.f32 %v1258_v1, %v7526_v44  ;;  %v7582_v41 = vsub.f32 %v1865_v63, %v7536_v26 }
  0xde   :  { %v1346_v38 = vand.u32 4294901760, %v1345_v23  ;;  %v6486_v23 = vpack.c.bf16 %v7517_v24, %v7515_v5 }
  0xdf   :  { %5520 = vmatpush3.msra.mxu0 %v7105_v54  ;;  %v1336_v54 = vand.u32 4294901760, %v1335_v40  ;;  %v1952_v40 = vsub.f32 %v7484_v32, %v8406_v37  ;;  %v1371_v47 = vand.u32 4294901760, %v1370_v7  ;;  %v1998_v7 = vsub.f32 %v7517_v24, %v8409_v25 }
  0xe0   :  { %5622 = vmatpush3.msra.mxu1 %v7120_v61  ;;  %5522 = vmatmul.mubr.msk.f32.vlgmr.msra.gmra.mrb[0].mxu0 %vm43_vm5, %v7233_v18  ;;  %v1943_v61 = vand.u32 4294901760, %v1942_v33  ;;  %v1356_v18 = vsub.f32 %v7429_v27, %v1355_v42  ;;  %v1984_v33 = vsub.f32 %v7491_v56, %v8404_v43 }
  0xe1   :  { %5624 = vmatmul.mubr.msk.f32.vlgmr.msra.gmra.mrb[0].mxu1 %vm43_vm5, %v7230_v17  ;;  %6383 = vmatprep.subr.bf16.mxu0 %v7405_v39  ;;  %v7508_v17 = vsub.f32 %v4907_v3, %v1276_v22  ;;  %v1963_v3 = vsub.f32 %v7443_v31, %v1962_v2  ;;  %v8408_v22 = vand.u32 4294901760, %v7515_v5  ;;  %v1999_v10 = vand.u32 4294901760, %v1998_v7 }
  0xe2   :  { %6455 = vmatprep.subr.bf16.mxu1 %v7447_v34  ;;  %6385 = vmatpush3.bf16.msra.mxu0 %v7405_v39  ;;  %v1357_v19 = vand.u32 4294901760, %v1356_v18  ;;  %v1985_v43 = vand.u32 4294901760, %v1984_v33 }
  0xe3   :  { %6457 = vmatpush3.bf16.msra.mxu1 %v7447_v34  ;;  %6387 = vmatprep.subr.bf16.mxu0 %v7449_v46  ;;  %v8402_v16 = vand.u32 4294901760, %v7508_v17  ;;  %v1964_v11 = vand.u32 4294901760, %v1963_v3  ;;  %v1378_v3 = vand.u32 4294901760, %v1377_v13 }
  0xe4   :  { %6459 = vmatprep.subr.bf16.mxu1 %v7465_v50  ;;  %5640 = vmatprep.mubr.f32.mxu0 %v1336_v54  ;;  %v1971_v54 = vand.u32 4294901760, %v1970_v4  ;;  %v1991_v4 = vsub.f32 %v7515_v5, %v8408_v22  ;;  %v6394_v1 = vpack.c.bf16 %v1364_v29, %v1357_v19  ;;  %v7587_v22 = vand.u32 4294901760, %v7571_v9 }
  0xe5   :  { %5742 = vmatprep.mubr.f32.mxu1 %v1943_v61  ;;  %v1384_v61 = vsub.f32 %v7506_v59, %v8403_v8  ;;  %v1391_v18 = vsub.f32 %v7508_v17, %v8402_v16  ;;  %v1953_v16 = vand.u32 4294901760, %v1952_v40  ;;  %v1978_v8 = vand.u32 4294901760, %v1977_v48 }
  0xe6   :  { %6389 = vmatpush3.bf16.msra.mxu0 %v7449_v46  ;;  %v6466_v37 = vpack.c.bf16 %v1971_v54, %v1964_v11  ;;  %v6398_v63 = vpack.c.bf16 %v1378_v3, %v1371_v47  ;;  %v1992_v25 = vand.u32 4294901760, %v1991_v4  ;;  %v7591_v19 = vand.u32 4294901760, %v7582_v41  ;;  %v4933_v54 = vld [vmem:[%s8398_s1 + $0xe8] sm:$0xff]  ;;  %v4948_v47 = vld [vmem:[%s8398_s1 + $0x120] sm:$0xff]  ;;  %v4950_v4 = vld [vmem:[%s8398_s1 + $0x130] sm:$0xff] }
  0xe7   :  { %6461 = vmatpush3.bf16.msra.mxu1 %v7465_v50  ;;  %6391 = vmatprep.subr.bf16.mxu0 %v7467_v52  ;;  %v1385_v13 = vand.u32 4294901760, %v1384_v61  ;;  %v1392_v0 = vand.u32 4294901760, %v1391_v18  ;;  %v6470_v29 = vpack.c.bf16 %v1985_v43, %v1978_v8  ;;  %v1398_v48 = vsub.f32 %v7571_v9, %v7587_v22  ;;  %v4934_v61 = vld [vmem:[%s8398_s1 + $0xf0] sm:$0xff]  ;;  %v4949_v3 = vld [vmem:[%s8398_s1 + $0x128] sm:$0xff] }
  0xe8   :  { %6463 = vmatprep.subr.bf16.mxu1 %v7472_v51  ;;  %v2005_v33 = vsub.f32 %v7582_v41, %v7591_v19 }
  0xe9   :  { %v6402_v40 = vpack.c.bf16 %v1392_v0, %v1385_v13  ;;  %v1399_v43 = vand.u32 4294901760, %v1398_v48  ;;  %v6406_v0 = vpack.c.bf16 %v7441_v30, %v7429_v27  ;;  %v8431_v27 = vand.u32 4294901760, %v7484_v32 }
  0xea   :  { %6393 = vmatpush3.bf16.msra.mxu0 %v7467_v52  ;;  %v2006_v8 = vand.u32 4294901760, %v2005_v33  ;;  %v8432_v30 = vand.u32 4294901760, %v7489_v49  ;;  %v2481_v48 = vand.u32 4294901760, %v4934_v61 }
  0xeb   :  { %6465 = vmatpush3.bf16.msra.mxu1 %v7472_v51  ;;  %5638 = vmatprep.subr.mxu0 %v7526_v44 }
  0xec   :  { %5740 = vmatprep.subr.mxu1 %v7536_v26 }
  0xee   :  { %5639 = vmatpush3.msra.mxu0 %v7526_v44 }
  0xef   :  { %5741 = vmatpush3.msra.mxu1 %v7536_v26  ;;  %5641 = vmatmul.mubr.f32.vlgmr.msra.gmra.mrb[2].mxu0 %v1346_v38  ;;  %v6474_v38 = vpack.c.bf16 %v1999_v10, %v1992_v25  ;;  %v6478_v10 = vpack.c.bf16 %v7461_v36, %v7443_v31  ;;  %v6414_v25 = vpack.c.bf16 %v7508_v17, %v7506_v59  ;;  %v8433_v31 = vand.u32 4294901760, %v7491_v56 }
  0xf0   :  { %6395 = vmatprep.subr.bf16.mxu0 %v6394_v1  ;;  %5743 = vmatmul.mubr.f32.vlgmr.msra.gmra.mrb[2].mxu1 %v1953_v16  ;;  %v6482_v16 = vpack.c.bf16 %v7491_v56, %v7489_v49  ;;  %v8434_v36 = vand.u32 4294901760, %v7506_v59  ;;  %v2447_v49 = vpop.permute.xlu1 %2446  ;;  %v3045_v56 = vpop.permute.xlu0 %3044 }
  0xf1   :  { %6467 = vmatprep.subr.bf16.mxu1 %v6466_v37  ;;  %6397 = vmatpush3.bf16.msra.mxu0 %v6394_v1  ;;  %vm2451_vm14 = vcmp.eq.s32.totalorder %v2447_v49, %v7206_v35  ;;  %vm3049_vm15 = vcmp.eq.s32.totalorder %v3045_v56, %v7206_v35  ;;  %v2478_v1 = vand.u32 4294901760, %v4933_v54 }
  0xf2   :  { %5657 = vmatprep.mubr.msk.f32.mxu0 %vm43_vm5, %v7351_v53  ;;  %6469 = vmatpush3.bf16.msra.mxu1 %v6466_v37  ;;  %v6410_v37 = vpack.c.bf16 %v7479_v6, %v7469_v58 }
  0xf3   :  { %5759 = vmatprep.mubr.msk.f32.mxu1 %vm43_vm5, %v7354_v55  ;;  %6399 = vmatprep.subr.bf16.mxu0 %v6398_v63 }
  0xf4   :  { %6471 = vmatprep.subr.bf16.mxu1 %v6470_v29  ;;  %v2450_v59 = vpop.permute.xlu1 %2449 }
  0xf5   :  { %6401 = vmatpush3.bf16.msra.mxu0 %v6398_v63  ;;  %vm2452_vm0 = vcmp.eq.s32.totalorder %v2450_v59, %v7206_v35  ;;  %v4936_v63 = vld [vmem:[%s8398_s1 + $0x100] sm:$0xff] }
  0xf6   :  { %6473 = vmatpush3.bf16.msra.mxu1 %v6470_v29  ;;  %6403 = vmatprep.subr.bf16.mxu0 %v6402_v40 }
  0xf7   :  { %6475 = vmatprep.subr.bf16.mxu1 %v6474_v38 }
  0xf9   :  { %6405 = vmatpush3.bf16.msra.mxu0 %v6402_v40  ;;  %v3076_v40 = vand.u32 4294901760, %v4948_v47 }
  0xfa   :  { %6477 = vmatpush3.bf16.msra.mxu1 %v6474_v38  ;;  %5655 = vmatprep.subr.mxu0 %v1399_v43  ;;  %v4952_v38 = vld [vmem:[%s8398_s1 + $0x140] sm:$0xff] }
  0xfb   :  { %5757 = vmatprep.subr.mxu1 %v2006_v8 }
  0xfd   :  { %5656 = vmatpush3.msra.mxu0 %v1399_v43 }
  0xfe   :  { %5758 = vmatpush3.msra.mxu1 %v2006_v8  ;;  %5658 = vmatmul.mubr.msk.f32.vlgmr.msra.gmra.mrb[2].mxu0 %vm43_vm5, %v7439_v28 }
  0xff   :  { %6407 = vmatprep.subr.bf16.mxu0 %v6406_v0  ;;  %5760 = vmatmul.mubr.msk.f32.vlgmr.msra.gmra.mrb[2].mxu1 %vm43_vm5, %v7434_v21 }
 0x100   :  { %6479 = vmatprep.subr.bf16.mxu1 %v6478_v10  ;;  %6409 = vmatpush3.bf16.msra.mxu0 %v6406_v0  ;;  %v3079_v0 = vand.u32 4294901760, %v4949_v3 }
 0x101   :  { %5674 = vmatprep.mubr.f32.mxu0 %v7378_v60  ;;  %6481 = vmatpush3.bf16.msra.mxu1 %v6478_v10  ;;  %v6502_v60 = vpack.c.bf16 %v1969_v62, %v1962_v2  ;;  %v8436_v2 = vand.u32 4294901760, %v7515_v5  ;;  %v3082_v10 = vand.u32 4294901760, %v4950_v4 }
 0x102   :  { %5776 = vmatprep.mubr.f32.mxu1 %v7389_v14  ;;  %6411 = vmatprep.subr.bf16.mxu0 %v6410_v37  ;;  %v8429_v14 = vand.u32 4294901760, %v7469_v58  ;;  %v8435_v58 = vand.u32 4294901760, %v7508_v17  ;;  %v7815_v59 = vsub.f32 %v4949_v3, %v3079_v0 }
 0x103   :  { %6483 = vmatprep.subr.bf16.mxu1 %v6482_v16 }
 0x104   :  { %6413 = vmatpush3.bf16.msra.mxu0 %v6410_v37  ;;  %v2487_v37 = vand.u32 4294901760, %v4936_v63 }
 0x105   :  { %6485 = vmatpush3.bf16.msra.mxu1 %v6482_v16  ;;  %6415 = vmatprep.subr.bf16.mxu0 %v6414_v25 }
 0x106   :  { %6487 = vmatprep.subr.bf16.mxu1 %v6486_v23 }
 0x108   :  { %6417 = vmatpush3.bf16.msra.mxu0 %v6414_v25 }
 0x109   :  { %6489 = vmatpush3.bf16.msra.mxu1 %v6486_v23  ;;  %5672 = vmatprep.subr.mxu0 %v7571_v9 }
 0x10a   :  { %5774 = vmatprep.subr.mxu1 %v7582_v41 }
 0x10c   :  { %5673 = vmatpush3.msra.mxu0 %v7571_v9  ;;  %v4935_v9 = vld [vmem:[%s8398_s1 + $0xf8] sm:$0xff] }
 0x10d   :  { %5775 = vmatpush3.msra.mxu1 %v7582_v41  ;;  %5675 = vmatmul.mubr.f32.vlgmr.msra.gmra.mrb[2].mxu0 %v7493_v57  ;;  %v6430_v41 = vpack.c.bf16 %v1362_v15, %v1355_v42  ;;  %v6506_v42 = vpack.c.bf16 %v8433_v31, %v8432_v30  ;;  %v6438_v15 = vpack.c.bf16 %v8435_v58, %v8434_v36  ;;  %v8438_v57 = vmov 0.0   ;;  %v4938_v36 = vld [vmem:[%s8398_s1 + $0x110] sm:$0x3] }
 0x10e   :  { %6419 = vmatprep.subr.bf16.mxu0 %v7405_v39  ;;  %5777 = vmatmul.mubr.f32.vlgmr.msra.gmra.mrb[2].mxu1 %v7484_v32  ;;  %v7681_v62 = vsel %vm2451_vm14, 1.0, %v8438_v57  ;;  %v7685_v17 = vsel %vm3049_vm15, 1.0, %v8438_v57  ;;  %v7704_v11 = vsel %vm2452_vm0, 1.0, %v8438_v57  ;;  %v2484_v8 = vand.u32 4294901760, %v4935_v9 }
 0x10f   :  { %6491 = vmatprep.subr.bf16.mxu1 %v7447_v34  ;;  %6421 = vmatpush3.bf16.msra.mxu0 %v7405_v39  ;;  %v2466_v5 = vsel %vm43_vm5, %v7681_v62, 0  ;;  %v7787_v30 = vsub.f32 %v4948_v47, %v3076_v40  ;;  %v7798_v58 = vsub.f32 %v4934_v61, %v2481_v48 }
 0x110   :  { %5691 = vmatprep.mubr.f32.mxu0 %v1334_v12  ;;  %6493 = vmatpush3.bf16.msra.mxu1 %v7447_v34  ;;  %v8430_v12 = vand.u32 4294901760, %v7479_v6  ;;  %v8437_v6 = vand.u32 4294901760, %v7517_v24  ;;  %v3048_v24 = vpop.permute.xlu1 %3047  ;;  %v7791_v31 = vpack.c.bf16 %v2484_v8, %v2481_v48  ;;  %v7807_v49 = vsub.f32 %v4935_v9, %v2484_v8 }
 0x111   :  { %5793 = vmatprep.mubr.f32.mxu1 %v1941_v20  ;;  %6423 = vmatprep.subr.bf16.mxu0 %v7449_v46  ;;  %vm3050_vm1 = vcmp.eq.s32.totalorder %v3048_v24, %v7206_v35  ;;  %v2472_v24 = vsel %vm50_vm4, %v4938_v36, 0 }
 0x112   :  { %6495 = vmatprep.subr.bf16.mxu1 %v7465_v50  ;;  %v6434_v20 = vpack.c.bf16 %v8430_v12, %v8429_v14  ;;  %v6510_v32 = vpack.c.bf16 %v8437_v6, %v8436_v2  ;;  %v7735_v18 = vsel %vm3050_vm1, 1.0, %v8438_v57  ;;  %v3088_v14 = vand.u32 4294901760, %v4952_v38  ;;  %v4953_v6 = vld [vmem:[%s8398_s1 + $0x148] sm:$0x3] }
 0x113   :  { %6425 = vmatpush3.bf16.msra.mxu0 %v7449_v46  ;;  %v3067_v43 = vsel %vm43_vm5, %v7735_v18, 0  ;;  %v7777_v12 = vsub.f32 %v4933_v54, %v2478_v1  ;;  %v8417_v54 = vand.u32 4294901760, %v7798_v58  ;;  %v8416_v47 = vand.u32 4294901760, %v7807_v49 }
 0x114   :  { %6497 = vmatpush3.bf16.msra.mxu1 %v7465_v50  ;;  %6427 = vmatprep.subr.bf16.mxu0 %v7467_v52  ;;  %v7841_v9 = vsub.f32 %v4952_v38, %v3088_v14 }
 0x115   :  { %6499 = vmatprep.subr.bf16.mxu1 %v7472_v51 }
 0x117   :  { %6429 = vmatpush3.bf16.msra.mxu0 %v7467_v52 }
 0x118   :  { %6501 = vmatpush3.bf16.msra.mxu1 %v7472_v51  ;;  %5689 = vmatprep.subr.mxu0 %v7526_v44 }
 0x119   :  { %5791 = vmatprep.subr.mxu1 %v7536_v26 }
 0x11b   :  { %5690 = vmatpush3.msra.mxu0 %v7526_v44 }
 0x11c   :  { %5792 = vmatpush3.msra.mxu1 %v7536_v26  ;;  %5692 = vmatmul.mubr.f32.vlgmr.msra.gmra.mrb[2].mxu0 %v1344_v45  ;;  %v3064_v45 = vsel %vm43_vm5, %v7685_v17, 0 }
 0x11d   :  { %6431 = vmatprep.subr.bf16.mxu0 %v6430_v41  ;;  %5794 = vmatmul.mubr.f32.vlgmr.msra.gmra.mrb[2].mxu1 %v8431_v27 }
 0x11e   :  { %6503 = vmatprep.subr.bf16.mxu1 %v6502_v60  ;;  %6433 = vmatpush3.bf16.msra.mxu0 %v6430_v41 }
 0x11f   :  { %5708 = vmatprep.mubr.msk.f32.mxu0 %vm43_vm5, %v7351_v53  ;;  %6505 = vmatpush3.bf16.msra.mxu1 %v6502_v60 }
 0x120   :  { %5810 = vmatprep.mubr.msk.f32.mxu1 %vm43_vm5, %v7354_v55  ;;  %6435 = vmatprep.subr.bf16.mxu0 %v6434_v20 }
 0x121   :  { %6507 = vmatprep.subr.bf16.mxu1 %v6506_v42 }
 0x122   :  { %6437 = vmatpush3.bf16.msra.mxu0 %v6434_v20 }
 0x123   :  { %6509 = vmatpush3.bf16.msra.mxu1 %v6506_v42  ;;  %6439 = vmatprep.subr.bf16.mxu0 %v6438_v15  ;;  %v7793_v42 = vpack.c.bf16 %v3082_v10, %v3079_v0  ;;  %v2591_v0 = vsub.f32 %v7807_v49, %v8416_v47 }
 0x124   :  { %6511 = vmatprep.subr.bf16.mxu1 %v6510_v32 }
 0x126   :  { %6441 = vmatpush3.bf16.msra.mxu0 %v6438_v15 }
 0x127   :  { %6513 = vmatpush3.bf16.msra.mxu1 %v6510_v32  ;;  %5706 = vmatprep.subr.mxu0 %v7587_v22 }
 0x128   :  { %5808 = vmatprep.subr.mxu1 %v7591_v19 }
 0x12a   :  { %5707 = vmatpush3.msra.mxu0 %v7587_v22  ;;  %v7701_v22 = vsub.f32 %v2466_v5, %v2466_v5  ;;  %v7817_v5 = vsub.f32 %v4950_v4, %v3082_v10 }
 0x12b   :  { %5809 = vmatpush3.msra.mxu1 %v7591_v19  ;;  %5709 = vmatmul.mubr.msk.f32.vlgmr.msra.gmra.mrb[2].mxu0 %vm43_vm5, %v7439_v28  ;;  %v4937_v19 = vld [vmem:[%s8398_s1 + $0x108] sm:$0xff] }
 0x12c   :  { %6443 = vmatprep.subr.bf16.mxu0 %v7405_v39  ;;  %5811 = vmatmul.mubr.msk.f32.vlgmr.msra.gmra.mrb[2].mxu1 %vm43_vm5, %v7434_v21  ;;  %v2548_v7 = vand.u32 4294901760, %v7701_v22  ;;  %v2490_v16 = vand.u32 4294901760, %v4937_v19 }
 0x12d   :  { %6515 = vmatprep.subr.bf16.mxu1 %v7447_v34  ;;  %6445 = vmatpush3.bf16.msra.mxu0 %v7405_v39  ;;  %v4932_v39 = vld [vmem:[%s8398_s1 + $0xe0] sm:$0xff] }
 0x12e   :  { %5725 = vmatprep.mubr.msk.f32.mxu0 %vm43_vm5, %v7351_v53  ;;  %6517 = vmatpush3.bf16.msra.mxu1 %v7447_v34  ;;  %v4947_v53 = vld [vmem:[%s8398_s1 + $0x118] sm:$0xff]  ;;  %v7722_v34 = vsub.f32 %v3064_v45, %v3064_v45  ;;  %v2549_v25 = vsub.f32 %v7701_v22, %v2548_v7  ;;  %v7801_v15 = vpack.c.bf16 %v2490_v16, %v2487_v37 }
 0x12f   :  { %5827 = vmatprep.mubr.msk.f32.mxu1 %vm43_vm5, %v7354_v55  ;;  %6447 = vmatprep.subr.bf16.mxu0 %v7449_v46  ;;  %v2469_v55 = vsel %vm43_vm5, %v7704_v11, 0  ;;  %v3073_v13 = vand.u32 4294901760, %v4947_v53 }
 0x130   :  { %6519 = vmatprep.subr.bf16.mxu1 %v7465_v50  ;;  %v7756_v29 = vsub.f32 %v2469_v55, %v2469_v55  ;;  %v3146_v33 = vand.u32 4294901760, %v7722_v34  ;;  %v2550_v2 = vand.u32 4294901760, %v2549_v25 }
 0x131   :  { %6449 = vmatpush3.bf16.msra.mxu0 %v7449_v46  ;;  %v2475_v46 = vand.u32 4294901760, %v4932_v39  ;;  %v7785_v27 = vsub.f32 %v4947_v53, %v3073_v13  ;;  %v7829_v53 = vsub.f32 %v4936_v63, %v2487_v37  ;;  %v8419_v37 = vand.u32 4294901760, %v7841_v9 }
 0x132   :  { %6521 = vmatpush3.bf16.msra.mxu1 %v7465_v50  ;;  %6451 = vmatprep.subr.bf16.mxu0 %v7467_v52  ;;  %v4951_v50 = vld [vmem:[%s8398_s1 + $0x138] sm:$0xff]  ;;  %v3147_v20 = vsub.f32 %v7722_v34, %v3146_v33  ;;  %v8420_v63 = vand.u32 4294901760, %v7756_v29 }
 0x133   :  { %6523 = vmatprep.subr.bf16.mxu1 %v7472_v51  ;;  %v7771_v23 = vsub.f32 %v4932_v39, %v2475_v46  ;;  %v7775_v41 = vpack.c.bf16 %v2478_v1, %v2475_v46  ;;  %v3085_v60 = vand.u32 4294901760, %v4951_v50  ;;  %v3070_v39 = vsel %vm50_vm4, %v4953_v6, 0 }
 0x134   :  { %v3148_v45 = vand.u32 4294901760, %v3147_v20  ;;  %v8414_v46 = vand.u32 4294901760, %v7815_v59  ;;  %v8413_v1 = vand.u32 4294901760, %v7817_v5  ;;  %v7860_v48 = vand.u32 4294901760, %v3070_v39 }
 0x135   :  { %6453 = vmatpush3.bf16.msra.mxu0 %v7467_v52  ;;  %v7780_v52 = vpack.c.bf16 %v3076_v40, %v3073_v13  ;;  %v2569_v32 = vand.u32 4294901760, %v7771_v23  ;;  %v7812_v56 = vpack.c.bf16 %v3088_v14, %v3085_v60  ;;  %v7839_v61 = vsub.f32 %v4951_v50, %v3085_v60 }
 0x136   :  { %6525 = vmatpush3.bf16.msra.mxu1 %v7472_v51  ;;  %5723 = vmatprep.subr.mxu0 %v7526_v44  ;;  %v7789_v51 = vsub.f32 %v3067_v43, %v3067_v43  ;;  %v7850_v13 = vand.u32 4294901760, %v2472_v24  ;;  %v2584_v50 = vsub.f32 %v7798_v58, %v8417_v54  ;;  %v8411_v38 = vand.u32 4294901760, %v7829_v53 }
 0x137   :  { %5825 = vmatprep.subr.mxu1 %v7536_v26  ;;  %v2570_v55 = vsub.f32 %v7771_v23, %v2569_v32  ;;  %v8418_v10 = vand.u32 4294901760, %v7839_v61  ;;  %v3182_v60 = vsub.f32 %v7815_v59, %v8414_v46  ;;  %v3189_v14 = vsub.f32 %v7817_v5, %v8413_v1 }
 0x138   :  { %v8415_v4 = vand.u32 4294901760, %v7789_v51  ;;  %v2559_v20 = vsub.f32 %v7756_v29, %v8420_v63  ;;  %v2585_v6 = vand.u32 4294901760, %v2584_v50  ;;  %v3203_v50 = vsub.f32 %v7841_v9, %v8419_v37 }
 0x139   :  { %5724 = vmatpush3.msra.mxu0 %v7526_v44  ;;  %v2576_v44 = vand.u32 4294901760, %v7777_v12  ;;  %v2571_v8 = vand.u32 4294901760, %v2570_v55  ;;  %v3183_v1 = vand.u32 4294901760, %v3182_v60  ;;  %v3190_v46 = vand.u32 4294901760, %v3189_v14 }
 0x13a   :  { %5826 = vmatpush3.msra.mxu1 %v7536_v26  ;;  %5726 = vmatmul.mubr.msk.f32.vlgmr.msra.gmra.mrb[2].mxu0 %vm43_vm5, %v7439_v28  ;;  %v3167_v26 = vand.u32 4294901760, %v7785_v27  ;;  %v3174_v28 = vand.u32 4294901760, %v7787_v30  ;;  %v3157_v25 = vsub.f32 %v7789_v51, %v8415_v4  ;;  %v2560_v4 = vand.u32 4294901760, %v2559_v20 }
 0x13b   :  { %5828 = vmatmul.mubr.msk.f32.vlgmr.msra.gmra.mrb[2].mxu1 %vm43_vm5, %v7434_v21  ;;  %6527 = vmatprep.subr.bf16.mxu0 %v7775_v41  ;;  %v7831_v21 = vsub.f32 %v4937_v19, %v2490_v16  ;;  %v2577_v3 = vsub.f32 %v7777_v12, %v2576_v44  ;;  %v3204_v63 = vand.u32 4294901760, %v3203_v50  ;;  %v6630_v20 = vpack.c.bf16 %v7841_v9, %v7839_v61  ;;  %v4980_v50 = vld [vmem:[%s8398_s1 + $0x1a0] sm:$0xff] }
 0x13c   :  { %6599 = vmatprep.subr.bf16.mxu1 %v7780_v52  ;;  %6529 = vmatpush3.bf16.msra.mxu0 %v7775_v41  ;;  %v3168_v19 = vsub.f32 %v7785_v27, %v3167_v26  ;;  %v3175_v40 = vsub.f32 %v7787_v30, %v3174_v28 }
 0x13d   :  { %6601 = vmatpush3.bf16.msra.mxu1 %v7780_v52  ;;  %6531 = vmatprep.subr.bf16.mxu0 %v7791_v31  ;;  %v8412_v43 = vand.u32 4294901760, %v7831_v21  ;;  %v2578_v16 = vand.u32 4294901760, %v2577_v3  ;;  %v7895_v3 = vsub.f32 %v2472_v24, %v7850_v13 }
 0x13e   :  { %6603 = vmatprep.subr.bf16.mxu1 %v7793_v42  ;;  %5844 = vmatprep.mubr.f32.mxu0 %v2550_v2  ;;  %v3169_v36 = vand.u32 4294901760, %v3168_v19  ;;  %v3176_v2 = vand.u32 4294901760, %v3175_v40  ;;  %v2592_v19 = vand.u32 4294901760, %v2591_v0  ;;  %v3196_v40 = vsub.f32 %v7839_v61, %v8418_v10 }
 0x13f   :  { %5946 = vmatprep.mubr.f32.mxu1 %v3148_v45  ;;  %v2598_v45 = vsub.f32 %v7829_v53, %v8411_v38  ;;  %v2605_v55 = vsub.f32 %v7831_v21, %v8412_v43  ;;  %v7906_v38 = vsub.f32 %v3070_v39, %v7860_v48  ;;  %v6538_v24 = vpack.c.bf16 %v2578_v16, %v2571_v8 }
 0x140   :  { %6533 = vmatpush3.bf16.msra.mxu0 %v7791_v31  ;;  %v3158_v43 = vand.u32 4294901760, %v3157_v25  ;;  %v6610_v47 = vpack.c.bf16 %v3176_v2, %v3169_v36  ;;  %v7911_v10 = vand.u32 4294901760, %v7895_v3  ;;  %v6542_v39 = vpack.c.bf16 %v2592_v19, %v2585_v6  ;;  %v4963_v36 = vld [vmem:[%s8398_s1 + $0x158] sm:$0xff] }
 0x141   :  { %6605 = vmatpush3.bf16.msra.mxu1 %v7793_v42  ;;  %6535 = vmatprep.subr.bf16.mxu0 %v7801_v15  ;;  %v2599_v0 = vand.u32 4294901760, %v2598_v45  ;;  %v2606_v54 = vand.u32 4294901760, %v2605_v55  ;;  %v3197_v37 = vand.u32 4294901760, %v3196_v40  ;;  %v7915_v8 = vand.u32 4294901760, %v7906_v38  ;;  %v4979_v19 = vld [vmem:[%s8398_s1 + $0x198] sm:$0xff] }
 0x142   :  { %6607 = vmatprep.subr.bf16.mxu1 %v7812_v56  ;;  %v6614_v16 = vpack.c.bf16 %v3190_v46, %v3183_v1  ;;  %v2612_v60 = vsub.f32 %v7895_v3, %v7911_v10  ;;  %v3682_v55 = vand.u32 4294901760, %v4963_v36 }
 0x143   :  { %v6546_v25 = vpack.c.bf16 %v2606_v54, %v2599_v0  ;;  %v3210_v14 = vsub.f32 %v7906_v38, %v7915_v8  ;;  %v6550_v54 = vpack.c.bf16 %v7777_v12, %v7771_v23  ;;  %v8442_v12 = vand.u32 4294901760, %v7789_v51  ;;  %v4967_v0 = vld [vmem:[%s8398_s1 + $0x178] sm:$0xff] }
 0x144   :  { %6537 = vmatpush3.bf16.msra.mxu0 %v7801_v15  ;;  %v2613_v46 = vand.u32 4294901760, %v2612_v60  ;;  %v4982_v60 = vld [vmem:[%s8398_s1 + $0x1b0] sm:$0xff] }
 0x145   :  { %6609 = vmatpush3.bf16.msra.mxu1 %v7812_v56  ;;  %5842 = vmatprep.subr.mxu0 %v7850_v13  ;;  %v3211_v1 = vand.u32 4294901760, %v3210_v14  ;;  %v4291_v14 = vand.u32 4294901760, %v4979_v19 }
 0x146   :  { %5944 = vmatprep.subr.mxu1 %v7860_v48 }
 0x148   :  { %5843 = vmatpush3.msra.mxu0 %v7850_v13 }
 0x149   :  { %5945 = vmatpush3.msra.mxu1 %v7860_v48  ;;  %5845 = vmatmul.mubr.f32.vlgmr.msra.gmra.mrb[4].mxu0 %v2560_v4  ;;  %v6618_v4 = vpack.c.bf16 %v3204_v63, %v3197_v37  ;;  %v6554_v63 = vpack.c.bf16 %v7807_v49, %v7798_v58  ;;  %v6558_v37 = vpack.c.bf16 %v7831_v21, %v7829_v53 }
 0x14a   :  { %6539 = vmatprep.subr.bf16.mxu0 %v6538_v24  ;;  %5947 = vmatmul.mubr.f32.vlgmr.msra.gmra.mrb[4].mxu1 %v3158_v43  ;;  %v6626_v43 = vpack.c.bf16 %v7817_v5, %v7815_v59 }
 0x14b   :  { %6611 = vmatprep.subr.bf16.mxu1 %v6610_v47  ;;  %6541 = vmatpush3.bf16.msra.mxu0 %v6538_v24  ;;  %v4966_v24 = vld [vmem:[%s8398_s1 + $0x170] sm:$0xff] }
 0x14c   :  { %5861 = vmatprep.mubr.msk.f32.mxu0 %vm43_vm5, %v7681_v62  ;;  %6613 = vmatpush3.bf16.msra.mxu1 %v6610_v47  ;;  %v6622_v47 = vpack.c.bf16 %v7787_v30, %v7785_v27  ;;  %v8443_v27 = vand.u32 4294901760, %v7815_v59  ;;  %v8444_v30 = vand.u32 4294901760, %v7817_v5  ;;  %v8448_v59 = vand.u32 4294901760, %v7841_v9  ;;  %v4962_v9 = vld [vmem:[%s8398_s1 + $0x150] sm:$0xff] }
 0x14d   :  { %5963 = vmatprep.mubr.msk.f32.mxu1 %vm43_vm5, %v7685_v17  ;;  %6543 = vmatprep.subr.bf16.mxu0 %v6542_v39  ;;  %v3679_v45 = vand.u32 4294901760, %v4962_v9 }
 0x14e   :  { %6615 = vmatprep.subr.bf16.mxu1 %v6614_v16 }
 0x14f   :  { %6545 = vmatpush3.bf16.msra.mxu0 %v6542_v39 }
 0x150   :  { %6617 = vmatpush3.bf16.msra.mxu1 %v6614_v16  ;;  %6547 = vmatprep.subr.bf16.mxu0 %v6546_v25 }
 0x151   :  { %6619 = vmatprep.subr.bf16.mxu1 %v6618_v4 }
 0x153   :  { %6549 = vmatpush3.bf16.msra.mxu0 %v6546_v25  ;;  %v4981_v25 = vld [vmem:[%s8398_s1 + $0x1a8] sm:$0xff] }
 0x154   :  { %6621 = vmatpush3.bf16.msra.mxu1 %v6618_v4  ;;  %5859 = vmatprep.subr.mxu0 %v2613_v46 }
 0x155   :  { %5961 = vmatprep.subr.mxu1 %v3211_v1 }
 0x157   :  { %5860 = vmatpush3.msra.mxu0 %v2613_v46 }
 0x158   :  { %5962 = vmatpush3.msra.mxu1 %v3211_v1  ;;  %5862 = vmatmul.mubr.msk.f32.vlgmr.msra.gmra.mrb[4].mxu0 %vm43_vm5, %v7704_v11 }
 0x159   :  { %6551 = vmatprep.subr.bf16.mxu0 %v6550_v54  ;;  %5964 = vmatmul.mubr.msk.f32.vlgmr.msra.gmra.mrb[4].mxu1 %vm43_vm5, %v7735_v18 }
 0x15a   :  { %6623 = vmatprep.subr.bf16.mxu1 %v6622_v47  ;;  %6553 = vmatpush3.bf16.msra.mxu0 %v6550_v54  ;;  %v4294_v54 = vand.u32 4294901760, %v4980_v50 }
 0x15b   :  { %5878 = vmatprep.mubr.f32.mxu0 %v7701_v22  ;;  %6625 = vmatpush3.bf16.msra.mxu1 %v6622_v47  ;;  %v6574_v22 = vpack.c.bf16 %v2576_v44, %v2569_v32  ;;  %v6650_v32 = vpack.c.bf16 %v8444_v30, %v8443_v27  ;;  %v3651_v44 = vpop.permute.xlu1 %3650  ;;  %v3691_v47 = vand.u32 4294901760, %v4966_v24 }
 0x15c   :  { %5980 = vmatprep.mubr.f32.mxu1 %v7722_v34  ;;  %6555 = vmatprep.subr.bf16.mxu0 %v6554_v63  ;;  %v6646_v34 = vpack.c.bf16 %v3174_v28, %v3167_v26  ;;  %vm3655_vm2 = vcmp.eq.s32.totalorder %v3651_v44, %v7206_v35  ;;  %v8117_v27 = vpack.c.bf16 %v4294_v54, %v4291_v14  ;;  %v4983_v44 = vld [vmem:[%s8398_s1 + $0x1b8] sm:$0x3] }
 0x15d   :  { %6627 = vmatprep.subr.bf16.mxu1 %v6626_v43  ;;  %v8005_v28 = vsel %vm3655_vm2, 1.0, %v8438_v57 }
 0x15e   :  { %6557 = vmatpush3.bf16.msra.mxu0 %v6554_v63  ;;  %v3694_v63 = vand.u32 4294901760, %v4967_v0 }
 0x15f   :  { %6629 = vmatpush3.bf16.msra.mxu1 %v6626_v43  ;;  %6559 = vmatprep.subr.bf16.mxu0 %v6558_v37  ;;  %v4257_v26 = vpop.permute.xlu1 %4256 }
 0x160   :  { %6631 = vmatprep.subr.bf16.mxu1 %v6630_v20  ;;  %vm4261_vm3 = vcmp.eq.s32.totalorder %v4257_v26, %v7206_v35  ;;  %v8119_v30 = vpack.c.bf16 %v3694_v63, %v3691_v47  ;;  %v8140_v26 = vsub.f32 %v4979_v19, %v4291_v14 }
 0x162   :  { %6561 = vmatpush3.bf16.msra.mxu0 %v6558_v37  ;;  %v4297_v37 = vand.u32 4294901760, %v4981_v25  ;;  %v8424_v19 = vand.u32 4294901760, %v8140_v26 }
 0x163   :  { %6633 = vmatpush3.bf16.msra.mxu1 %v6630_v20  ;;  %5876 = vmatprep.subr.mxu0 %v7895_v3  ;;  %v4260_v2 = vpop.permute.xlu1 %4259  ;;  %v4300_v20 = vand.u32 4294901760, %v4982_v60 }
 0x164   :  { %5978 = vmatprep.subr.mxu1 %v7906_v38  ;;  %vm4262_vm7 = vcmp.eq.s32.totalorder %v4260_v2, %v7206_v35 }
 0x165   :  { %v8063_v40 = vsel %vm4262_vm7, 1.0, %v8438_v57 }
 0x166   :  { %5877 = vmatpush3.msra.mxu0 %v7895_v3  ;;  %v4279_v1 = vsel %vm43_vm5, %v8063_v40, 0 }
 0x167   :  { %5979 = vmatpush3.msra.mxu1 %v7906_v38  ;;  %5879 = vmatmul.mubr.f32.vlgmr.msra.gmra.mrb[4].mxu0 %v7756_v29  ;;  %v8441_v38 = vand.u32 4294901760, %v7807_v49 }
 0x168   :  { %6563 = vmatprep.subr.bf16.mxu0 %v7775_v41  ;;  %5981 = vmatmul.mubr.f32.vlgmr.msra.gmra.mrb[4].mxu1 %v7789_v51  ;;  %v8447_v51 = vand.u32 4294901760, %v7839_v61  ;;  %v3654_v61 = vpop.permute.xlu0 %3653 }
 0x169   :  { %6635 = vmatprep.subr.bf16.mxu1 %v7780_v52  ;;  %6565 = vmatpush3.bf16.msra.mxu0 %v7775_v41  ;;  %vm3656_vm6 = vcmp.eq.s32.totalorder %v3654_v61, %v7206_v35 }
 0x16a   :  { %5895 = vmatprep.mubr.f32.mxu0 %v2548_v7  ;;  %6637 = vmatpush3.bf16.msra.mxu1 %v7780_v52  ;;  %v8439_v7 = vand.u32 4294901760, %v7756_v29  ;;  %v8445_v29 = vand.u32 4294901760, %v7829_v53  ;;  %v6654_v5 = vpack.c.bf16 %v8448_v59, %v8447_v51  ;;  %v8009_v53 = vsel %vm4261_vm3, 1.0, %v8438_v57 }
 0x16b   :  { %5997 = vmatprep.mubr.f32.mxu1 %v3146_v33  ;;  %6567 = vmatprep.subr.bf16.mxu0 %v7791_v31  ;;  %v8440_v33 = vand.u32 4294901760, %v7798_v58  ;;  %v8446_v58 = vand.u32 4294901760, %v7831_v21  ;;  %v3670_v21 = vsel %vm43_vm5, %v8005_v28, 0  ;;  %v8053_v35 = vsel %vm3656_vm6, 1.0, %v8438_v57 }
 0x16c   :  { %6639 = vmatprep.subr.bf16.mxu1 %v7793_v42  ;;  %v8030_v6 = vsub.f32 %v3670_v21, %v3670_v21  ;;  %v8077_v57 = vpack.c.bf16 %v3682_v55, %v3679_v45  ;;  %v8142_v21 = vsub.f32 %v4980_v50, %v4294_v54 }
 0x16d   :  { %6569 = vmatpush3.bf16.msra.mxu0 %v7791_v31  ;;  %v6578_v23 = vpack.c.bf16 %v8441_v38, %v8440_v33  ;;  %v6582_v49 = vpack.c.bf16 %v8446_v58, %v8445_v29  ;;  %v8103_v33 = vsub.f32 %v4963_v36, %v3682_v55  ;;  %v4282_v36 = vsel %vm50_vm4, %v4983_v44, 0 }
 0x16e   :  { %6641 = vmatpush3.bf16.msra.mxu1 %v7793_v42  ;;  %6571 = vmatprep.subr.bf16.mxu0 %v7801_v15  ;;  %v3752_v39 = vand.u32 4294901760, %v8030_v6  ;;  %v8423_v50 = vand.u32 4294901760, %v8142_v21 }
 0x16f   :  { %6643 = vmatprep.subr.bf16.mxu1 %v7812_v56 }
 0x170   :  { %v3753_v43 = vsub.f32 %v8030_v6, %v3752_v39 }
 0x171   :  { %6573 = vmatpush3.bf16.msra.mxu0 %v7801_v15 }
 0x172   :  { %6645 = vmatpush3.bf16.msra.mxu1 %v7812_v56  ;;  %5893 = vmatprep.subr.mxu0 %v7850_v13  ;;  %v3754_v58 = vand.u32 4294901760, %v3753_v43  ;;  %v4394_v43 = vsub.f32 %v8140_v26, %v8424_v19 }
 0x173   :  { %5995 = vmatprep.subr.mxu1 %v7860_v48 }
 0x175   :  { %5894 = vmatpush3.msra.mxu0 %v7850_v13 }
 0x176   :  { %5996 = vmatpush3.msra.mxu1 %v7860_v48  ;;  %5896 = vmatmul.mubr.f32.vlgmr.msra.gmra.mrb[4].mxu0 %v8439_v7 }
 0x177   :  { %6575 = vmatprep.subr.bf16.mxu0 %v6574_v22  ;;  %5998 = vmatmul.mubr.f32.vlgmr.msra.gmra.mrb[4].mxu1 %v8442_v12 }
 0x178   :  { %6647 = vmatprep.subr.bf16.mxu1 %v6646_v34  ;;  %6577 = vmatpush3.bf16.msra.mxu0 %v6574_v22  ;;  %v8095_v22 = vsub.f32 %v4962_v9, %v3679_v45 }
 0x179   :  { %5912 = vmatprep.mubr.msk.f32.mxu0 %vm43_vm5, %v7681_v62  ;;  %6649 = vmatpush3.bf16.msra.mxu1 %v6646_v34 }
 0x17a   :  { %6014 = vmatprep.mubr.msk.f32.mxu1 %vm43_vm5, %v7685_v17  ;;  %6579 = vmatprep.subr.bf16.mxu0 %v6578_v23  ;;  %v3773_v51 = vand.u32 4294901760, %v8095_v22 }
 0x17b   :  { %6651 = vmatprep.subr.bf16.mxu1 %v6650_v32 }
 0x17c   :  { %6581 = vmatpush3.bf16.msra.mxu0 %v6578_v23  ;;  %v3774_v45 = vsub.f32 %v8095_v22, %v3773_v51 }
 0x17d   :  { %6653 = vmatpush3.bf16.msra.mxu1 %v6650_v32  ;;  %6583 = vmatprep.subr.bf16.mxu0 %v6582_v49  ;;  %v4968_v32 = vld [vmem:[%s8398_s1 + $0x180] sm:$0x3] }
 0x17e   :  { %6655 = vmatprep.subr.bf16.mxu1 %v6654_v5  ;;  %v3676_v61 = vsel %vm50_vm4, %v4968_v32, 0  ;;  %vm621_vm4 = vcmask 261120  }
 0x180   :  { %6585 = vmatpush3.bf16.msra.mxu0 %v6582_v49  ;;  %v8127_v49 = vpack.c.bf16 %v4300_v20, %v4297_v37 }
 0x181   :  { %6657 = vmatpush3.bf16.msra.mxu1 %v6654_v5  ;;  %5910 = vmatprep.subr.mxu0 %v7911_v10 }
 0x182   :  { %6012 = vmatprep.subr.mxu1 %v7915_v8 }
 0x184   :  { %5911 = vmatpush3.msra.mxu0 %v7911_v10  ;;  %v4276_v10 = vsel %vm43_vm5, %v8009_v53, 0 }
 0x185   :  { %6013 = vmatpush3.msra.mxu1 %v7915_v8  ;;  %5913 = vmatmul.mubr.msk.f32.vlgmr.msra.gmra.mrb[4].mxu0 %vm43_vm5, %v7704_v11  ;;  %v8040_v3 = vsub.f32 %v4276_v10, %v4276_v10  ;;  %v8154_v10 = vsub.f32 %v4966_v24, %v3691_v47  ;;  %v8175_v24 = vand.u32 4294901760, %v3676_v61 }
 0x186   :  { %6587 = vmatprep.subr.bf16.mxu0 %v7775_v41  ;;  %6015 = vmatmul.mubr.msk.f32.vlgmr.msra.gmra.mrb[4].mxu1 %vm43_vm5, %v7735_v18 }
 0x187   :  { %6659 = vmatprep.subr.bf16.mxu1 %v7780_v52  ;;  %6589 = vmatpush3.bf16.msra.mxu0 %v7775_v41  ;;  %v4977_v41 = vld [vmem:[%s8398_s1 + $0x188] sm:$0xff]  ;;  %v4358_v46 = vand.u32 4294901760, %v8040_v3 }
 0x188   :  { %5929 = vmatprep.mubr.msk.f32.mxu0 %vm43_vm5, %v7681_v62  ;;  %6661 = vmatpush3.bf16.msra.mxu1 %v7780_v52  ;;  %v4978_v62 = vld [vmem:[%s8398_s1 + $0x190] sm:$0xff]  ;;  %v4964_v52 = vld [vmem:[%s8398_s1 + $0x160] sm:$0xff] }
 0x189   :  { %6031 = vmatprep.mubr.msk.f32.mxu1 %vm43_vm5, %v7685_v17  ;;  %6591 = vmatprep.subr.bf16.mxu0 %v7791_v31  ;;  %v4965_v17 = vld [vmem:[%s8398_s1 + $0x168] sm:$0xff]  ;;  %v4288_v8 = vand.u32 4294901760, %v4978_v62  ;;  %v3685_v16 = vand.u32 4294901760, %v4964_v52  ;;  %v4359_v38 = vsub.f32 %v8040_v3, %v4358_v46  ;;  %s6955_s1 = smov 32  }
 0x18a   :  { %6663 = vmatprep.subr.bf16.mxu1 %v7793_v42  ;;  %v3688_v4 = vand.u32 4294901760, %v4965_v17 }
 0x18b   :  { %6593 = vmatpush3.bf16.msra.mxu0 %v7791_v31  ;;  %v4285_v31 = vand.u32 4294901760, %v4977_v41  ;;  %v8113_v12 = vsub.f32 %v4978_v62, %v4288_v8  ;;  %v8124_v29 = vsub.f32 %v4964_v52, %v3685_v16  ;;  %v4360_v9 = vand.u32 4294901760, %v4359_v38 }
 0x18c   :  { %6665 = vmatpush3.bf16.msra.mxu1 %v7793_v42  ;;  %6595 = vmatprep.subr.bf16.mxu0 %v7801_v15  ;;  %v3673_v42 = vsel %vm43_vm5, %v8053_v35, 0  ;;  %v8133_v59 = vsub.f32 %v4965_v17, %v3688_v4  ;;  %v8166_v62 = vsub.f32 %v4982_v60, %v4300_v20  ;;  %v8422_v60 = vand.u32 4294901760, %v8154_v10 }
 0x18d   :  { %6667 = vmatprep.subr.bf16.mxu1 %v7812_v56  ;;  %v8099_v34 = vpack.c.bf16 %v4288_v8, %v4285_v31  ;;  %v8101_v7 = vsub.f32 %v3673_v42, %v3673_v42  ;;  %v8111_v23 = vsub.f32 %v4977_v41, %v4285_v31  ;;  %v3787_v2 = vand.u32 4294901760, %v8124_v29 }
 0x18e   :  { %v8428_v55 = vand.u32 4294901760, %v8133_v59  ;;  %v8164_v41 = vsub.f32 %v4981_v25, %v4297_v37  ;;  %v8426_v54 = vand.u32 4294901760, %v8166_v62  ;;  %v4401_v37 = vsub.f32 %v8142_v21, %v8423_v50 }
 0x18f   :  { %6597 = vmatpush3.bf16.msra.mxu0 %v7801_v15  ;;  %v8106_v15 = vpack.c.bf16 %v3688_v4, %v3685_v16  ;;  %v3762_v5 = vand.u32 4294901760, %v8101_v7  ;;  %v8187_v16 = vand.u32 4294901760, %v4282_v36  ;;  %v3788_v25 = vsub.f32 %v8124_v29, %v3787_v2 }
 0x190   :  { %6669 = vmatpush3.bf16.msra.mxu1 %v7812_v56  ;;  %5927 = vmatprep.subr.mxu0 %v7850_v13  ;;  %v8115_v56 = vsub.f32 %v4279_v1, %v4279_v1  ;;  %v3775_v4 = vand.u32 4294901760, %v3774_v45  ;;  %v3795_v14 = vsub.f32 %v8133_v59, %v8428_v55  ;;  %v8425_v1 = vand.u32 4294901760, %v8164_v41 }
 0x191   :  { %6029 = vmatprep.subr.mxu1 %v7860_v48  ;;  %v3802_v44 = vsub.f32 %v8154_v10, %v8422_v60  ;;  %v8219_v45 = vsub.f32 %v3676_v61, %v8175_v24  ;;  %v4402_v60 = vand.u32 4294901760, %v4401_v37 }
 0x192   :  { %v8427_v17 = vand.u32 4294901760, %v8115_v56 }
 0x193   :  { %5928 = vmatpush3.msra.mxu0 %v7850_v13  ;;  %v3780_v13 = vand.u32 4294901760, %v8103_v33 }
 0x194   :  { %6030 = vmatpush3.msra.mxu1 %v7860_v48  ;;  %5930 = vmatmul.mubr.msk.f32.vlgmr.msra.gmra.mrb[4].mxu0 %vm43_vm5, %v7704_v11  ;;  %v4379_v48 = vand.u32 4294901760, %v8111_v23  ;;  %v4386_v11 = vand.u32 4294901760, %v8113_v12 }
 0x195   :  { %6032 = vmatmul.mubr.msk.f32.vlgmr.msra.gmra.mrb[4].mxu1 %vm43_vm5, %v7735_v18  ;;  %6671 = vmatprep.subr.bf16.mxu0 %v8077_v57  ;;  %v8156_v18 = vsub.f32 %v4967_v0, %v3694_v63  ;;  %v3781_v52 = vsub.f32 %v8103_v33, %v3780_v13  ;;  %v3763_v0 = vsub.f32 %v8101_v7, %v3762_v5 }
 0x196   :  { %6743 = vmatprep.subr.bf16.mxu1 %v8099_v34  ;;  %6673 = vmatpush3.bf16.msra.mxu0 %v8077_v57  ;;  %v4380_v31 = vsub.f32 %v8111_v23, %v4379_v48  ;;  %v4387_v8 = vsub.f32 %v8113_v12, %v4386_v11  ;;  %v4369_v63 = vsub.f32 %v8115_v56, %v8427_v17 }
 0x197   :  { %6745 = vmatpush3.bf16.msra.mxu1 %v8099_v34  ;;  %6675 = vmatprep.subr.bf16.mxu0 %v8106_v15  ;;  %v8421_v42 = vand.u32 4294901760, %v8156_v18  ;;  %v3782_v47 = vand.u32 4294901760, %v3781_v52  ;;  %v3764_v20 = vand.u32 4294901760, %v3763_v0  ;;  %v3796_v52 = vand.u32 4294901760, %v3795_v14 }
 0x198   :  { %6747 = vmatprep.subr.bf16.mxu1 %v8117_v27  ;;  %6048 = vmatprep.mubr.f32.mxu0 %v3754_v58  ;;  %v4381_v38 = vand.u32 4294901760, %v4380_v31  ;;  %v4388_v32 = vand.u32 4294901760, %v4387_v8  ;;  %v3789_v58 = vand.u32 4294901760, %v3788_v25  ;;  %v4408_v0 = vsub.f32 %v8164_v41, %v8425_v1 }
 0x199   :  { %6150 = vmatprep.mubr.f32.mxu1 %v4360_v9  ;;  %v3809_v9 = vsub.f32 %v8156_v18, %v8421_v42  ;;  %v4415_v31 = vsub.f32 %v8166_v62, %v8426_v54  ;;  %v8230_v8 = vsub.f32 %v4282_v36, %v8187_v16  ;;  %v6682_v61 = vpack.c.bf16 %v3782_v47, %v3775_v4 }
 0x19a   :  { %6677 = vmatpush3.bf16.msra.mxu0 %v8106_v15  ;;  %v4370_v25 = vand.u32 4294901760, %v4369_v63  ;;  %v4395_v42 = vand.u32 4294901760, %v4394_v43  ;;  %v6754_v50 = vpack.c.bf16 %v4388_v32, %v4381_v38  ;;  %v3803_v14 = vand.u32 4294901760, %v3802_v44 }
 0x19b   :  { %6749 = vmatpush3.bf16.msra.mxu1 %v8117_v27  ;;  %6679 = vmatprep.subr.bf16.mxu0 %v8119_v30  ;;  %v3810_v19 = vand.u32 4294901760, %v3809_v9  ;;  %v8235_v1 = vand.u32 4294901760, %v8219_v45  ;;  %v6686_v54 = vpack.c.bf16 %v3796_v52, %v3789_v58  ;;  %v4409_v36 = vand.u32 4294901760, %v4408_v0 }
 0x19c   :  { %6751 = vmatprep.subr.bf16.mxu1 %v8127_v49  ;;  %v4416_v17 = vand.u32 4294901760, %v4415_v31  ;;  %v8239_v55 = vand.u32 4294901760, %v8230_v8  ;;  %v6758_v4 = vpack.c.bf16 %v4402_v60, %v4395_v42  ;;  %v6702_v58 = vpack.c.bf16 %v8156_v18, %v8154_v10 }
 0x19d   :  { %v6690_v47 = vpack.c.bf16 %v3810_v19, %v3803_v14  ;;  %v3816_v63 = vsub.f32 %v8219_v45, %v8235_v1  ;;  %v6694_v19 = vpack.c.bf16 %v8103_v33, %v8095_v22  ;;  %v6774_v9 = vpack.c.bf16 %v8166_v62, %v8164_v41 }
 0x19e   :  { %6681 = vmatpush3.bf16.msra.mxu0 %v8119_v30  ;;  %v6762_v43 = vpack.c.bf16 %v4416_v17, %v4409_v36  ;;  %v4422_v37 = vsub.f32 %v8230_v8, %v8239_v55  ;;  %v6766_v17 = vpack.c.bf16 %v8113_v12, %v8111_v23  ;;  %v8450_v22 = vand.u32 4294901760, %v8115_v56 }
 0x19f   :  { %6753 = vmatpush3.bf16.msra.mxu1 %v8127_v49  ;;  %6046 = vmatprep.subr.mxu0 %v8175_v24  ;;  %v3817_v60 = vand.u32 4294901760, %v3816_v63  ;;  %v8451_v33 = vand.u32 4294901760, %v8140_v26  ;;  %v8452_v23 = vand.u32 4294901760, %v8142_v21 }
 0x1a0   :  { %6148 = vmatprep.subr.mxu1 %v8187_v16  ;;  %v4423_v42 = vand.u32 4294901760, %v4422_v37 }
 0x1a1   :  { %v6794_v12 = vpack.c.bf16 %v8452_v23, %v8451_v33 }
 0x1a2   :  { %6047 = vmatpush3.msra.mxu0 %v8175_v24 }
 0x1a3   :  { %6149 = vmatpush3.msra.mxu1 %v8187_v16  ;;  %6049 = vmatmul.mubr.f32.vlgmr.msra.gmra.mrb[6].mxu0 %v3764_v20 }
 0x1a4   :  { %6683 = vmatprep.subr.bf16.mxu0 %v6682_v61  ;;  %6151 = vmatmul.mubr.f32.vlgmr.msra.gmra.mrb[6].mxu1 %v4370_v25 }
 0x1a5   :  { %6755 = vmatprep.subr.bf16.mxu1 %v6754_v50  ;;  %6685 = vmatpush3.bf16.msra.mxu0 %v6682_v61 }
 0x1a6   :  { %6065 = vmatprep.mubr.msk.f32.mxu0 %vm43_vm5, %v8005_v28  ;;  %6757 = vmatpush3.bf16.msra.mxu1 %v6754_v50  ;;  %v6698_v50 = vpack.c.bf16 %v8133_v59, %v8124_v29  ;;  %v8454_v29 = vand.u32 4294901760, %v8156_v18 }
 0x1a7   :  { %6167 = vmatprep.mubr.msk.f32.mxu1 %vm43_vm5, %v8009_v53  ;;  %6687 = vmatprep.subr.bf16.mxu0 %v6686_v54 }
 0x1a8   :  { %6759 = vmatprep.subr.bf16.mxu1 %v6758_v4 }
 0x1a9   :  { %6689 = vmatpush3.bf16.msra.mxu0 %v6686_v54  ;;  %v6770_v54 = vpack.c.bf16 %v8142_v21, %v8140_v26 }
 0x1aa   :  { %6761 = vmatpush3.bf16.msra.mxu1 %v6758_v4  ;;  %6691 = vmatprep.subr.bf16.mxu0 %v6690_v47 }
 0x1ab   :  { %6763 = vmatprep.subr.bf16.mxu1 %v6762_v43 }
 0x1ad   :  { %6693 = vmatpush3.bf16.msra.mxu0 %v6690_v47 }
 0x1ae   :  { %6765 = vmatpush3.bf16.msra.mxu1 %v6762_v43  ;;  %6063 = vmatprep.subr.mxu0 %v3817_v60 }
 0x1af   :  { %6165 = vmatprep.subr.mxu1 %v4423_v42 }
 0x1b1   :  { %6064 = vmatpush3.msra.mxu0 %v3817_v60 }
 0x1b2   :  { %6166 = vmatpush3.msra.mxu1 %v4423_v42  ;;  %6066 = vmatmul.mubr.msk.f32.vlgmr.msra.gmra.mrb[6].mxu0 %vm43_vm5, %v8053_v35 }
 0x1b3   :  { %6695 = vmatprep.subr.bf16.mxu0 %v6694_v19  ;;  %6168 = vmatmul.mubr.msk.f32.vlgmr.msra.gmra.mrb[6].mxu1 %vm43_vm5, %v8063_v40  ;;  %v5523_v20 = vpop.f32.mrb[0].mxu0 }
 0x1b4   :  { %6767 = vmatprep.subr.bf16.mxu1 %v6766_v17  ;;  %6697 = vmatpush3.bf16.msra.mxu0 %v6694_v19  ;;  %623 = vst.msk [vmem:[#allocation2 + $0x10] sm:$0xff] %vm621_vm4, %v5523_v20  ;;  %v5625_v38 = vpop.f32.mrb[0].mxu1  ;;  %v611_v32 = vpop.f32.mrb[1].mxu0 }
 0x1b5   :  { %6082 = vmatprep.mubr.f32.mxu0 %v8030_v6  ;;  %6769 = vmatpush3.bf16.msra.mxu1 %v6766_v17  ;;  %622 = vst.msk [vmem:[#allocation2] sm:$0xff] %vm621_vm4, %v611_v32  ;;  %v1210_v44 = vpop.f32.mrb[1].mxu1  ;;  %v6718_v6 = vpack.c.bf16 %v3780_v13, %v3773_v51 }
 0x1b6   :  { %6184 = vmatprep.mubr.f32.mxu1 %v8040_v3  ;;  %6699 = vmatprep.subr.bf16.mxu0 %v6698_v50  ;;  %v6790_v3 = vpack.c.bf16 %v4386_v11, %v4379_v48 }
 0x1b7   :  { %6771 = vmatprep.subr.bf16.mxu1 %v6770_v54  ;;  %1224 = vrot.lane.b32.xlu1 %v5625_v38, %s6955_s1 }
 0x1b8   :  { %6701 = vmatpush3.bf16.msra.mxu0 %v6698_v50  ;;  %1222 = vrot.lane.b32.xlu0 %v1210_v44, %s6955_s1 }
 0x1b9   :  { %6773 = vmatpush3.bf16.msra.mxu1 %v6770_v54  ;;  %6703 = vmatprep.subr.bf16.mxu0 %v6702_v58 }
 0x1ba   :  { %6775 = vmatprep.subr.bf16.mxu1 %v6774_v9 }
 0x1bc   :  { %6705 = vmatpush3.bf16.msra.mxu0 %v6702_v58 }
 0x1bd   :  { %6777 = vmatpush3.bf16.msra.mxu1 %v6774_v9  ;;  %6080 = vmatprep.subr.mxu0 %v8219_v45 }
 0x1be   :  { %6182 = vmatprep.subr.mxu1 %v8230_v8 }
 0x1c0   :  { %6081 = vmatpush3.msra.mxu0 %v8219_v45 }
 0x1c1   :  { %6183 = vmatpush3.msra.mxu1 %v8230_v8  ;;  %6083 = vmatmul.mubr.f32.vlgmr.msra.gmra.mrb[6].mxu0 %v8101_v7  ;;  %v8453_v7 = vand.u32 4294901760, %v8154_v10 }
 0x1c2   :  { %6707 = vmatprep.subr.bf16.mxu0 %v8077_v57  ;;  %6185 = vmatmul.mubr.f32.vlgmr.msra.gmra.mrb[6].mxu1 %v8115_v56  ;;  %v8455_v56 = vand.u32 4294901760, %v8164_v41 }
 0x1c3   :  { %6779 = vmatprep.subr.bf16.mxu1 %v8099_v34  ;;  %6709 = vmatpush3.bf16.msra.mxu0 %v8077_v57  ;;  %v6726_v51 = vpack.c.bf16 %v8454_v29, %v8453_v7 }
 0x1c4   :  { %6099 = vmatprep.mubr.f32.mxu0 %v3752_v39  ;;  %6781 = vmatpush3.bf16.msra.mxu1 %v8099_v34  ;;  %v8449_v39 = vand.u32 4294901760, %v8133_v59  ;;  %v8456_v59 = vand.u32 4294901760, %v8166_v62 }
 0x1c5   :  { %6201 = vmatprep.mubr.f32.mxu1 %v4358_v46  ;;  %6711 = vmatprep.subr.bf16.mxu0 %v8106_v15 }
 0x1c6   :  { %6783 = vmatprep.subr.bf16.mxu1 %v8117_v27  ;;  %v6722_v46 = vpack.c.bf16 %v8449_v39, %v3787_v2 }
 0x1c7   :  { %6713 = vmatpush3.bf16.msra.mxu0 %v8106_v15 }
 0x1c8   :  { %6785 = vmatpush3.bf16.msra.mxu1 %v8117_v27  ;;  %6715 = vmatprep.subr.bf16.mxu0 %v8119_v30 }
 0x1c9   :  { %6787 = vmatprep.subr.bf16.mxu1 %v8127_v49 }
 0x1cb   :  { %6717 = vmatpush3.bf16.msra.mxu0 %v8119_v30 }
 0x1cc   :  { %6789 = vmatpush3.bf16.msra.mxu1 %v8127_v49  ;;  %6097 = vmatprep.subr.mxu0 %v8175_v24 }
 0x1cd   :  { %6199 = vmatprep.subr.mxu1 %v8187_v16 }
 0x1cf   :  { %6098 = vmatpush3.msra.mxu0 %v8175_v24 }
 0x1d0   :  { %6200 = vmatpush3.msra.mxu1 %v8187_v16  ;;  %6100 = vmatmul.mubr.f32.vlgmr.msra.gmra.mrb[6].mxu0 %v3762_v5  ;;  %v6798_v5 = vpack.c.bf16 %v8456_v59, %v8455_v56 }
 0x1d1   :  { %6719 = vmatprep.subr.bf16.mxu0 %v6718_v6  ;;  %6202 = vmatmul.mubr.f32.vlgmr.msra.gmra.mrb[6].mxu1 %v8450_v22 }
 0x1d2   :  { %6791 = vmatprep.subr.bf16.mxu1 %v6790_v3  ;;  %6721 = vmatpush3.bf16.msra.mxu0 %v6718_v6 }
 0x1d3   :  { %6116 = vmatprep.mubr.msk.f32.mxu0 %vm43_vm5, %v8005_v28  ;;  %6793 = vmatpush3.bf16.msra.mxu1 %v6790_v3 }
 0x1d4   :  { %6218 = vmatprep.mubr.msk.f32.mxu1 %vm43_vm5, %v8009_v53  ;;  %6723 = vmatprep.subr.bf16.mxu0 %v6722_v46 }
 0x1d5   :  { %6795 = vmatprep.subr.bf16.mxu1 %v6794_v12 }
 0x1d6   :  { %6725 = vmatpush3.bf16.msra.mxu0 %v6722_v46 }
 0x1d7   :  { %6797 = vmatpush3.bf16.msra.mxu1 %v6794_v12  ;;  %6727 = vmatprep.subr.bf16.mxu0 %v6726_v51 }
 0x1d8   :  { %6799 = vmatprep.subr.bf16.mxu1 %v6798_v5 }
 0x1da   :  { %6729 = vmatpush3.bf16.msra.mxu0 %v6726_v51 }
 0x1db   :  { %6801 = vmatpush3.bf16.msra.mxu1 %v6798_v5  ;;  %6114 = vmatprep.subr.mxu0 %v8235_v1 }
 0x1dc   :  { %6216 = vmatprep.subr.mxu1 %v8239_v55 }
 0x1de   :  { %6115 = vmatpush3.msra.mxu0 %v8235_v1 }
 0x1df   :  { %6217 = vmatpush3.msra.mxu1 %v8239_v55  ;;  %6117 = vmatmul.mubr.msk.f32.vlgmr.msra.gmra.mrb[6].mxu0 %vm43_vm5, %v8053_v35 }
 0x1e0   :  { %6731 = vmatprep.subr.bf16.mxu0 %v8077_v57  ;;  %6219 = vmatmul.mubr.msk.f32.vlgmr.msra.gmra.mrb[6].mxu1 %vm43_vm5, %v8063_v40 }
 0x1e1   :  { %6803 = vmatprep.subr.bf16.mxu1 %v8099_v34  ;;  %6733 = vmatpush3.bf16.msra.mxu0 %v8077_v57 }
 0x1e2   :  { %6133 = vmatprep.mubr.msk.f32.mxu0 %vm43_vm5, %v8005_v28  ;;  %6805 = vmatpush3.bf16.msra.mxu1 %v8099_v34 }
 0x1e3   :  { %6235 = vmatprep.mubr.msk.f32.mxu1 %vm43_vm5, %v8009_v53  ;;  %6735 = vmatprep.subr.bf16.mxu0 %v8106_v15 }
 0x1e4   :  { %6807 = vmatprep.subr.bf16.mxu1 %v8117_v27 }
 0x1e5   :  { %6737 = vmatpush3.bf16.msra.mxu0 %v8106_v15 }
 0x1e6   :  { %6809 = vmatpush3.bf16.msra.mxu1 %v8117_v27  ;;  %6739 = vmatprep.subr.bf16.mxu0 %v8119_v30 }
 0x1e7   :  { %6811 = vmatprep.subr.bf16.mxu1 %v8127_v49 }
 0x1e9   :  { %6741 = vmatpush3.bf16.msra.mxu0 %v8119_v30 }
 0x1ea   :  { %6813 = vmatpush3.bf16.msra.mxu1 %v8127_v49  ;;  %6131 = vmatprep.subr.mxu0 %v8175_v24 }
 0x1eb   :  { %6233 = vmatprep.subr.mxu1 %v8187_v16 }
 0x1ed   :  { %6132 = vmatpush3.msra.mxu0 %v8175_v24 }
 0x1ee   :  { %6234 = vmatpush3.msra.mxu1 %v8187_v16  ;;  %6134 = vmatmul.mubr.msk.f32.vlgmr.msra.gmra.mrb[6].mxu0 %vm43_vm5, %v8053_v35 }
 0x1ef   :  { %6236 = vmatmul.mubr.msk.f32.vlgmr.msra.gmra.mrb[6].mxu1 %vm43_vm5, %v8063_v40  ;;  %vm1835_vm5 = vcmask 785920  }
 0x20d   :  { %v5727_v28 = vpop.f32.mrb[2].mxu0 }
 0x20e   :  { %v5829_v53 = vpop.f32.mrb[2].mxu1  ;;  %1831 = vrot.lane.b32.xlu1 %v5727_v28, %s6956_s9  ;;  %v1817_v57 = vpop.f32.mrb[3].mxu0 }
 0x20f   :  { %v2424_v34 = vpop.f32.mrb[3].mxu1  ;;  %1829 = vrot.lane.b32.xlu0 %v1817_v57, %s6956_s9 }
 0x212   :  { %2438 = vrot.lane.b32.xlu1 %v5829_v53, %s6957_s10 }
 0x213   :  { %2436 = vrot.lane.b32.xlu0 %v2424_v34, %s6957_s10 }
 0x229   :  { %v1225_v15 = vpop.permute.xlu1 %1224 }
 0x22a   :  { %1230 = vst.msk [vmem:[#allocation2 + $0x10] sm:$0xff] %vm1228_vm8, %v1225_v15  ;;  %v1223_v35 = vpop.permute.xlu0 %1222 }
 0x22b   :  { %1229 = vst.msk [vmem:[#allocation2] sm:$0xff] %vm1228_vm8, %v1223_v35 }
 0x267   :  { %v5931_v40 = vpop.f32.mrb[4].mxu0 }
 0x268   :  { %3042 = vst.msk [vmem:[#allocation2 + $0x18] sm:$0xff] %vm621_vm4, %v5931_v40  ;;  %v6033_v27 = vpop.f32.mrb[4].mxu1  ;;  %v3031_v30 = vpop.f32.mrb[5].mxu0 }
 0x269   :  { %3041 = vst.msk [vmem:[#allocation2 + $0x8] sm:$0xff] %vm621_vm4, %v3031_v30  ;;  %3643 = vrot.lane.b32.xlu1 %v6033_v27, %s6955_s1  ;;  %v3629_v49 = vpop.f32.mrb[5].mxu1 }
 0x26a   :  { %3641 = vrot.lane.b32.xlu0 %v3629_v49, %s6955_s1 }
 0x280   :  { %v1832_v13 = vpop.permute.xlu1 %1831 }
 0x281   :  { %1837 = vst.msk [vmem:[#allocation2 + $0x10] sm:$0xff] %vm1835_vm5, %v1832_v13  ;;  %v1830_v26 = vpop.permute.xlu0 %1829 }
 0x282   :  { %1836 = vst.msk [vmem:[#allocation2] sm:$0xff] %vm1835_vm5, %v1830_v26 }
 0x284   :  { %v2439_v21 = vpop.permute.xlu1 %2438 }
 0x285   :  { %2444 = vst.msk [vmem:[#allocation2 + $0x10] sm:$0xff] %vm2442_vm9, %v2439_v21  ;;  %v2437_v48 = vpop.permute.xlu0 %2436 }
 0x286   :  { %2443 = vst.msk [vmem:[#allocation2] sm:$0xff] %vm2442_vm9, %v2437_v48 }
 0x2c1   :  { %v6135_v11 = vpop.f32.mrb[6].mxu0 }
 0x2c2   :  { %v6237_v2 = vpop.f32.mrb[6].mxu1  ;;  %4249 = vrot.lane.b32.xlu1 %v6135_v11, %s6956_s9  ;;  %v4235_v10 = vpop.f32.mrb[7].mxu0 }
 0x2c3   :  { %v4841_v18 = vpop.f32.mrb[7].mxu1  ;;  %4247 = vrot.lane.b32.xlu0 %v4235_v10, %s6956_s9 }
 0x2c6   :  { %4855 = vrot.lane.b32.xlu1 %v6237_v2, %s6957_s10 }
 0x2c7   :  { %4853 = vrot.lane.b32.xlu0 %v4841_v18, %s6957_s10 }
 0x2db   :  { %v3644_v55 = vpop.permute.xlu1 %3643 }
 0x2dc   :  { %3648 = vst.msk [vmem:[#allocation2 + $0x18] sm:$0xff] %vm1228_vm8, %v3644_v55  ;;  %v3642_v41 = vpop.permute.xlu0 %3641 }
 0x2dd   :  { %3647 = vst.msk [vmem:[#allocation2 + $0x8] sm:$0xff] %vm1228_vm8, %v3642_v41 }
 0x334   :  { %v4250_v62 = vpop.permute.xlu1 %4249 }
 0x335   :  { %4254 = vst.msk [vmem:[#allocation2 + $0x18] sm:$0xff] %vm1835_vm5, %v4250_v62  ;;  %v4248_v24 = vpop.permute.xlu0 %4247 }
 0x336   :  { %4253 = vst.msk [vmem:[#allocation2 + $0x8] sm:$0xff] %vm1835_vm5, %v4248_v24 }
 0x338   :  { %v4856_v16 = vpop.permute.xlu1 %4855 }
 0x339   :  { %4860 = vst.msk [vmem:[#allocation2 + $0x18] sm:$0xff] %vm2442_vm9, %v4856_v16  ;;  %v4854_v1 = vpop.permute.xlu0 %4853 }
 0x33a   :  { %4859 = vst.msk [vmem:[#allocation2 + $0x8] sm:$0xff] %vm2442_vm9, %v4854_v1 }
 0x33b   :  { %6933 = shalt.err (!%p6930_p4)
}
 0x33c   :  { %s6934_s16 = scalar_lea.hbm %s8399_s2, 512 }
 0x33d   :  { %p6935_p5 = scmp.ne.s32.totalorder %s8399_s2, %s6934_s16  ;;  %p6938_p6 = scmp.lt.u32.totalorder %s6934_s16, %s8399_s2 }
 0x33f   :  { %p6940_p7 = pnand %p6938_p6, %p6935_p5 }
 0x341   :  { %6943 = shalt.err (!%p6940_p7)
}
 0x342   :  { %s6959_s20 = smov 256   ;;  %s6960_s21 = smov 16  }
 0x343   :  { %4872 = dma.vmem_to_hbm [thread:$0]  %s4867_s12, 512, %s8399_s2, [#allocation3], %s6959_s20, %s6959_s20, %s6960_s21  }
 0x344   :  { %6944 = dma.done.wait [#allocation3], 512  }
 0x345   :  { %6945 = vsyncadd [#allocation3], 4294966784 }
 0x346   :  { %4876 = vsyncpa [#allocation3], 1 }

</bundles_post_ra>
